<compile_context>
chip_gen: v6e
topology: v6e:2x2x1
jax: 0.10.0
libtpu: 0.0.40
codegen_flags: <defaults>
</compile_context>

<pallas_src>
import jax
import jax.numpy as jnp
from jax.experimental import pallas as pl
from jax.experimental.pallas import tpu as pltpu

EMBEDDING_SIZE = 128                 # C
HIDDEN_SIZE = 4 * EMBEDDING_SIZE     # 4C = 512
TILE_M = 256                         # rows (tokens) per grid step; sweep {256,512,1024}
_SUBLANE = 16                        # bf16 sublane packing granule


def _round_up(x, m):
    return ((x + m - 1) // m) * m


def _pick_tile_m(m_rows, requested):
    """Clamp the row tile so it (a) never exceeds the problem, (b) keeps the
    grid at >= 4 steps when possible (v7x: 2 TCs x >= 2 tiles each)."""
    tile = min(requested,
               _round_up(max(m_rows // 4, 1), _SUBLANE),
               _round_up(m_rows, _SUBLANE))
    return max(tile, _SUBLANE)


def ffn_kernel(x_ref, w1_ref, b1_ref, w2_ref, b2_ref, o_ref):
    # x_ref:  (TILE_M, C)   bf16 (or f32)
    # w1_ref: (C, 4C)       bf16   b1_ref: (1, 4C) f32
    # w2_ref: (4C, C)       bf16   b2_ref: (1, C)  f32
    # o_ref:  (TILE_M, C)   same dtype as x
    x = x_ref[...]

    # Linear(C -> 4C): bf16 MXU matmul, f32 accumulate; bias + ReLU in f32.
    h = jnp.dot(x, w1_ref[...], preferred_element_type=jnp.float32) + b1_ref[...]
    h = jnp.maximum(h, 0.0)

    # Linear(4C -> C): cast hidden back to the weight dtype only at the dot.
    y = jnp.dot(h.astype(w2_ref.dtype), w2_ref[...],
                preferred_element_type=jnp.float32) + b2_ref[...]

    # Dropout: identity in eval mode.
    o_ref[...] = y.astype(o_ref.dtype)


def feedforward_forward(x, w1, b1, w2, b2, *, tile_m=TILE_M):
    """x: (B, T, C); w1: (C, 4C); b1: (4C,); w2: (4C, C); b2: (C,).
    Returns (B, T, C)."""
    B, T, C = x.shape
    Hd = w1.shape[1]
    M = B * T

    tile_m = _pick_tile_m(M, tile_m)
    x2d = x.reshape(M, C)

    # Prefer M % tile_m == 0 upstream; pad only the ragged remainder if needed.
    M_pad = pl.cdiv(M, tile_m) * tile_m
    if M_pad != M:
        x2d = jnp.pad(x2d, ((0, M_pad - M), (0, 0)))

    # Biases kept in f32 so bias-add/ReLU run in f32 vregs on every generation.
    b1_2d = b1.astype(jnp.float32).reshape(1, Hd)
    b2_2d = b2.astype(jnp.float32).reshape(1, C)

    def build(single_buffered_weights):
        w_kwargs = ({"pipeline_mode": pl.Buffered(1)}
                    if single_buffered_weights else {})
        return pl.pallas_call(
            ffn_kernel,
            out_shape=jax.ShapeDtypeStruct((M_pad, C), x.dtype),
            grid_spec=pltpu.PrefetchScalarGridSpec(
                num_scalar_prefetch=0,
                grid=(M_pad // tile_m,),
                in_specs=[
                    pl.BlockSpec((tile_m, C), lambda i: (i, 0)),           # x tile
                    pl.BlockSpec((C, Hd), lambda i: (0, 0), **w_kwargs),   # W1
                    pl.BlockSpec((1, Hd), lambda i: (0, 0), **w_kwargs),   # b1
                    pl.BlockSpec((Hd, C), lambda i: (0, 0), **w_kwargs),   # W2
                    pl.BlockSpec((1, C), lambda i: (0, 0), **w_kwargs),    # b2
                ],
                out_specs=pl.BlockSpec((tile_m, C), lambda i: (i, 0)),
            ),
            compiler_params=pltpu.CompilerParams(
                dimension_semantics=("parallel",),
            ),
        )

    try:
        out2d = build(True)(x2d, w1, b1_2d, w2, b2_2d)
    except Exception:
        # pipeline_mode=Buffered(1) unsupported on this build -> fall back to
        # default double-buffered weights (~1 MiB extra VMEM, same result).
        out2d = build(False)(x2d, w1, b1_2d, w2, b2_2d)

    return out2d[:M].reshape(B, T, C)


def reference_forward(x, w1, b1, w2, b2):
    """Pure-JAX f32 reference mirroring the PyTorch forward (eval mode)."""
    h = jnp.maximum(x @ w1 + b1, 0.0)
    return h @ w2 + b2


if __name__ == "__main__":
    key = jax.random.PRNGKey(0)
    k_x, k_w1, k_b1, k_w2, k_b2 = jax.random.split(key, 5)

    B, T, C, Hd = 2, 64, EMBEDDING_SIZE, HIDDEN_SIZE

    # Deterministic init mimicking nn.Linear (uniform +/- 1/sqrt(fan_in)),
    # weights stored pre-transposed as (in_features, out_features).
    bound1 = 1.0 / (C ** 0.5)
    w1_f32 = jax.random.uniform(k_w1, (C, Hd), jnp.float32, -bound1, bound1)
    b1 = jax.random.uniform(k_b1, (Hd,), jnp.float32, -bound1, bound1)

    bound2 = 1.0 / (Hd ** 0.5)
    w2_f32 = jax.random.uniform(k_w2, (Hd, C), jnp.float32, -bound2, bound2)
    b2 = jax.random.uniform(k_b2, (C,), jnp.float32, -bound2, bound2)

    x_f32 = jax.random.normal(k_x, (B, T, C), dtype=jnp.float32)

    # bf16 activations/weights for the MXU path (f32 accumulation in-kernel).
    x = x_f32.astype(jnp.bfloat16)
    w1 = w1_f32.astype(jnp.bfloat16)
    w2 = w2_f32.astype(jnp.bfloat16)

    out = feedforward_forward(x, w1, b1, w2, b2)
    out = jax.block_until_ready(out)

    # f32 reference on the same (bf16-rounded) operands; tolerance loosened to
    # cover the bf16 hidden-activation and bf16 output rounding.
    ref = reference_forward(x.astype(jnp.float32), w1.astype(jnp.float32), b1,
                            w2.astype(jnp.float32), b2)
    assert out.shape == (B, T, C)
    assert jnp.allclose(out.astype(jnp.float32), ref, atol=2e-2, rtol=2e-2), \
        "mismatch vs reference"

    print("KERNEL_OK")
</pallas_src>

<mosaic_0001>
module attributes {stable_mosaic.version = 11 : i64} {
  func.func @ffn_kernel(%arg0: i32, %arg1: memref<32x128xbf16, #tpu.memory_space<vmem>>, %arg2: memref<128x512xbf16, #tpu.memory_space<vmem>>, %arg3: memref<1x512xf32, #tpu.memory_space<vmem>>, %arg4: memref<512x128xbf16, #tpu.memory_space<vmem>>, %arg5: memref<1x128xf32, #tpu.memory_space<vmem>>, %arg6: memref<32x128xbf16, #tpu.memory_space<vmem>>) attributes {dimension_semantics = [#tpu.dimension_semantics<parallel>], iteration_bounds = array<i64: 4>, scalar_prefetch = 0 : i64, scratch_operands = 0 : i64, tpu.core_type = #tpu.core_type<tc>, window_params = [{transform_indices = @transform_0, window_bounds = array<i64: 32, 128>}, {pipeline_mode = #tpu.pipeline_mode<synchronous>, transform_indices = @transform_1, window_bounds = array<i64: 128, 512>}, {pipeline_mode = #tpu.pipeline_mode<synchronous>, transform_indices = @transform_2, window_bounds = array<i64: 1, 512>}, {pipeline_mode = #tpu.pipeline_mode<synchronous>, transform_indices = @transform_3, window_bounds = array<i64: 512, 128>}, {pipeline_mode = #tpu.pipeline_mode<synchronous>, transform_indices = @transform_4, window_bounds = array<i64: 1, 128>}, {transform_indices = @transform_5, window_bounds = array<i64: 32, 128>}]} {
    %c0 = arith.constant 0 : index
    %c0_0 = arith.constant 0 : index
    %0 = vector.load %arg1[%c0, %c0_0] : memref<32x128xbf16, #tpu.memory_space<vmem>>, vector<32x128xbf16>
    %c0_1 = arith.constant 0 : index
    %c0_2 = arith.constant 0 : index
    %1 = vector.load %arg2[%c0_1, %c0_2] : memref<128x512xbf16, #tpu.memory_space<vmem>>, vector<128x512xbf16>
    %cst = arith.constant dense<0.000000e+00> : vector<32x512xf32>
    %2 = tpu.matmul %0, %1, %cst {dimension_numbers = #tpu.dot_dimension_numbers<[1], [0], [0], [1], [0, 0, 1, 1], [], []>} : vector<32x128xbf16>, vector<128x512xbf16>, vector<32x512xf32> -> vector<32x512xf32>
    %c0_3 = arith.constant 0 : index
    %c0_4 = arith.constant 0 : index
    %3 = vector.load %arg3[%c0_3, %c0_4] : memref<1x512xf32, #tpu.memory_space<vmem>>, vector<1x512xf32>
    %4 = vector.broadcast %3 : vector<1x512xf32> to vector<32x512xf32>
    %5 = arith.addf %2, %4 : vector<32x512xf32>
    %cst_5 = arith.constant 0.000000e+00 : f32
    %6 = vector.broadcast %cst_5 : f32 to vector<32x512xf32>
    %7 = arith.maximumf %5, %6 : vector<32x512xf32>
    %8 = arith.truncf %7 : vector<32x512xf32> to vector<32x512xbf16>
    %c0_6 = arith.constant 0 : index
    %c0_7 = arith.constant 0 : index
    %9 = vector.load %arg4[%c0_6, %c0_7] : memref<512x128xbf16, #tpu.memory_space<vmem>>, vector<512x128xbf16>
    %cst_8 = arith.constant dense<0.000000e+00> : vector<32x128xf32>
    %10 = tpu.matmul %8, %9, %cst_8 {dimension_numbers = #tpu.dot_dimension_numbers<[1], [0], [0], [1], [0, 0, 1, 1], [], []>} : vector<32x512xbf16>, vector<512x128xbf16>, vector<32x128xf32> -> vector<32x128xf32>
    %c0_9 = arith.constant 0 : index
    %c0_10 = arith.constant 0 : index
    %11 = vector.load %arg5[%c0_9, %c0_10] : memref<1x128xf32, #tpu.memory_space<vmem>>, vector<1x128xf32>
    %12 = vector.broadcast %11 : vector<1x128xf32> to vector<32x128xf32>
    %13 = arith.addf %10, %12 : vector<32x128xf32>
    %14 = arith.truncf %13 : vector<32x128xf32> to vector<32x128xbf16>
    %c0_11 = arith.constant 0 : index
    %c0_12 = arith.constant 0 : index
    %15 = vector.load %arg6[%c0_11, %c0_12] : memref<32x128xbf16, #tpu.memory_space<vmem>>, vector<32x128xbf16>
    tpu.vector_store %arg6[%c0_11, %c0_12], %14 {strides = array<i32>} : memref<32x128xbf16, #tpu.memory_space<vmem>>, vector<32x128xbf16>,
    return
  }
  func.func @transform_0(%arg0: i32) -> (i32, i32) {
    %c0_i32 = arith.constant 0 : i32
    %c0_i32_0 = arith.constant 0 : i32
    return %arg0, %c0_i32 : i32, i32
  }
  func.func @transform_1(%arg0: i32) -> (i32, i32) {
    %c0_i32 = arith.constant 0 : i32
    %c0_i32_0 = arith.constant 0 : i32
    %c0_i32_1 = arith.constant 0 : i32
    return %c0_i32, %c0_i32_0 : i32, i32
  }
  func.func @transform_2(%arg0: i32) -> (i32, i32) {
    %c0_i32 = arith.constant 0 : i32
    %c0_i32_0 = arith.constant 0 : i32
    %c0_i32_1 = arith.constant 0 : i32
    return %c0_i32, %c0_i32_0 : i32, i32
  }
  func.func @transform_3(%arg0: i32) -> (i32, i32) {
    %c0_i32 = arith.constant 0 : i32
    %c0_i32_0 = arith.constant 0 : i32
    %c0_i32_1 = arith.constant 0 : i32
    return %c0_i32, %c0_i32_0 : i32, i32
  }
  func.func @transform_4(%arg0: i32) -> (i32, i32) {
    %c0_i32 = arith.constant 0 : i32
    %c0_i32_0 = arith.constant 0 : i32
    %c0_i32_1 = arith.constant 0 : i32
    return %c0_i32, %c0_i32_0 : i32, i32
  }
  func.func @transform_5(%arg0: i32) -> (i32, i32) {
    %c0_i32 = arith.constant 0 : i32
    %c0_i32_0 = arith.constant 0 : i32
    return %arg0, %c0_i32 : i32, i32
  }
}

module attributes {stable_mosaic.version = 11 : i64} {
  func.func @ffn_kernel(%arg0: i32, %arg1: memref<32x128xbf16, #tpu.memory_space<vmem>>, %arg2: memref<128x512xbf16, #tpu.memory_space<vmem>>, %arg3: memref<1x512xf32, #tpu.memory_space<vmem>>, %arg4: memref<512x128xbf16, #tpu.memory_space<vmem>>, %arg5: memref<1x128xf32, #tpu.memory_space<vmem>>, %arg6: memref<32x128xbf16, #tpu.memory_space<vmem>>) attributes {dimension_semantics = [#tpu.dimension_semantics<parallel>], iteration_bounds = array<i64: 4>, scalar_prefetch = 0 : i64, scratch_operands = 0 : i64, tpu.core_type = #tpu.core_type<tc>, window_params = [{transform_indices = @transform_0, window_bounds = array<i64: 32, 128>}, {pipeline_mode = #tpu.pipeline_mode<synchronous>, transform_indices = @transform_1, window_bounds = array<i64: 128, 512>}, {pipeline_mode = #tpu.pipeline_mode<synchronous>, transform_indices = @transform_2, window_bounds = array<i64: 1, 512>}, {pipeline_mode = #tpu.pipeline_mode<synchronous>, transform_indices = @transform_3, window_bounds = array<i64: 512, 128>}, {pipeline_mode = #tpu.pipeline_mode<synchronous>, transform_indices = @transform_4, window_bounds = array<i64: 1, 128>}, {transform_indices = @transform_5, window_bounds = array<i64: 32, 128>}]} {
    %c0 = arith.constant 0 : index
    %c0_0 = arith.constant 0 : index
    %0 = vector.load %arg1[%c0, %c0_0] : memref<32x128xbf16, #tpu.memory_space<vmem>>, vector<32x128xbf16>
    %c0_1 = arith.constant 0 : index
    %c0_2 = arith.constant 0 : index
    %1 = vector.load %arg2[%c0_1, %c0_2] : memref<128x512xbf16, #tpu.memory_space<vmem>>, vector<128x512xbf16>
    %cst = arith.constant dense<0.000000e+00> : vector<32x512xf32>
    %2 = tpu.matmul %0, %1, %cst {dimension_numbers = #tpu.dot_dimension_numbers<[1], [0], [0], [1], [0, 0, 1, 1], [], []>} : vector<32x128xbf16>, vector<128x512xbf16>, vector<32x512xf32> -> vector<32x512xf32>
    %c0_3 = arith.constant 0 : index
    %c0_4 = arith.constant 0 : index
    %3 = vector.load %arg3[%c0_3, %c0_4] : memref<1x512xf32, #tpu.memory_space<vmem>>, vector<1x512xf32>
    %4 = vector.broadcast %3 : vector<1x512xf32> to vector<32x512xf32>
    %5 = arith.addf %2, %4 : vector<32x512xf32>
    %cst_5 = arith.constant 0.000000e+00 : f32
    %6 = vector.broadcast %cst_5 : f32 to vector<32x512xf32>
    %7 = arith.maximumf %5, %6 : vector<32x512xf32>
    %8 = arith.truncf %7 : vector<32x512xf32> to vector<32x512xbf16>
    %c0_6 = arith.constant 0 : index
    %c0_7 = arith.constant 0 : index
    %9 = vector.load %arg4[%c0_6, %c0_7] : memref<512x128xbf16, #tpu.memory_space<vmem>>, vector<512x128xbf16>
    %cst_8 = arith.constant dense<0.000000e+00> : vector<32x128xf32>
    %10 = tpu.matmul %8, %9, %cst_8 {dimension_numbers = #tpu.dot_dimension_numbers<[1], [0], [0], [1], [0, 0, 1, 1], [], []>} : vector<32x512xbf16>, vector<512x128xbf16>, vector<32x128xf32> -> vector<32x128xf32>
    %c0_9 = arith.constant 0 : index
    %c0_10 = arith.constant 0 : index
    %11 = vector.load %arg5[%c0_9, %c0_10] : memref<1x128xf32, #tpu.memory_space<vmem>>, vector<1x128xf32>
    %12 = vector.broadcast %11 : vector<1x128xf32> to vector<32x128xf32>
    %13 = arith.addf %10, %12 : vector<32x128xf32>
    %14 = arith.truncf %13 : vector<32x128xf32> to vector<32x128xbf16>
    %c0_11 = arith.constant 0 : index
    %c0_12 = arith.constant 0 : index
    %15 = vector.load %arg6[%c0_11, %c0_12] : memref<32x128xbf16, #tpu.memory_space<vmem>>, vector<32x128xbf16>
    tpu.vector_store %arg6[%c0_11, %c0_12], %14 {strides = array<i32>} : memref<32x128xbf16, #tpu.memory_space<vmem>>, vector<32x128xbf16>,
    return
  }
  func.func @transform_0(%arg0: i32) -> (i32, i32) {
    %c0_i32 = arith.constant 0 : i32
    %c0_i32_0 = arith.constant 0 : i32
    return %arg0, %c0_i32 : i32, i32
  }
  func.func @transform_1(%arg0: i32) -> (i32, i32) {
    %c0_i32 = arith.constant 0 : i32
    %c0_i32_0 = arith.constant 0 : i32
    %c0_i32_1 = arith.constant 0 : i32
    return %c0_i32, %c0_i32_0 : i32, i32
  }
  func.func @transform_2(%arg0: i32) -> (i32, i32) {
    %c0_i32 = arith.constant 0 : i32
    %c0_i32_0 = arith.constant 0 : i32
    %c0_i32_1 = arith.constant 0 : i32
    return %c0_i32, %c0_i32_0 : i32, i32
  }
  func.func @transform_3(%arg0: i32) -> (i32, i32) {
    %c0_i32 = arith.constant 0 : i32
    %c0_i32_0 = arith.constant 0 : i32
    %c0_i32_1 = arith.constant 0 : i32
    return %c0_i32, %c0_i32_0 : i32, i32
  }
  func.func @transform_4(%arg0: i32) -> (i32, i32) {
    %c0_i32 = arith.constant 0 : i32
    %c0_i32_0 = arith.constant 0 : i32
    %c0_i32_1 = arith.constant 0 : i32
    return %c0_i32, %c0_i32_0 : i32, i32
  }
  func.func @transform_5(%arg0: i32) -> (i32, i32) {
    %c0_i32 = arith.constant 0 : i32
    %c0_i32_0 = arith.constant 0 : i32
    return %arg0, %c0_i32 : i32, i32
  }
}

</mosaic_0001>

<bundles_post_ra>
// kernel: tpu_custom_call.1
= control target key start
LH: loop header
LB: loop body
LE: loop exit
PB: predicated region body
PF: predicated region fallthrough
CT: control target
= control target key end

     0   :  { %10 = vsyncpa [#allocation3], 0  ;;  %s1916_s0 = inlined_call_operand.hbm [shape: bf16[128,128], index: 0, kind: input, shape index: {}]   ;;  %s1917_s1 = inlined_call_operand.hbm [shape: bf16[128,512], index: 1, kind: input, shape index: {}]   ;;  %s1918_s2 = inlined_call_operand.hbm [shape: f32[1,512], index: 2, kind: input, shape index: {}]   ;;  %s1919_s3 = inlined_call_operand.hbm [shape: bf16[512,128], index: 3, kind: input, shape index: {}]   ;;  %s1920_s4 = inlined_call_operand.vmem [shape: f32[1,128], index: 4, kind: input, shape index: {}]   ;;  %s1921_s5 = inlined_call_operand.hbm [shape: bf16[128,128], index: 5, kind: output, shape index: {}]  }
   0x1   :  { %12 = vsyncpa [#allocation3 + $0x1], 0 }
   0x2   :  { %13 = vsyncpa [#allocation6], 0 }
   0x3   :  { %14 = vsyncpa [#allocation9], 0 }
   0x4   :  { %15 = vsyncpa [#allocation4], 0 }
   0x5   :  { %17 = vsyncpa [#allocation4 + $0x1], 0  ;;  %s1697_s18 = smov 0   ;;  %s1699_s19 = smov 0  }
   0x6   :  { %s1701_s20 = smov 0   ;;  %s1703_s21 = smov 0  }
   0x7 LB: > { %s1718_s22 = sadd.s32 4294967295, %s1653_s21   ;;  %s1145_s23 = sadd.s32 4294967294, %s1653_s21   ;;  %s1653_s21 = sphi %s1703_s21, %s1946_s21   ;;  %s1649_s20 = sphi %s1701_s20, %s1945_s20   ;;  %s1645_s19 = sphi %s1699_s19, %s1944_s19   ;;  %s1641_s18 = sphi %s1697_s18, %s1943_s18  }
   0x8   : > { %p43_p0 = scmp.ne.s32.totalorder %s1645_s19, %s1641_s18  ;;  %p1922_p1 = scmp.eq.s32.totalorder %s1718_s22, 0 }
   0x9   : > { %p157_p3 = scmp.eq.s32.totalorder %s1145_s23, 3  ;;  %p1146_p5 = scmp.ge.s32.totalorder %s1653_s21, 1 }
   0xa   : > { %p1727_p4 = por %p1922_p1, %p43_p0  ;;  %p164_p7 = scmp.lt.s32.totalorder %s1653_s21, 5 }
   0xb   : > { %p1732_p6 = por %p157_p3, %p43_p0  ;;  %s1655_s27 = smov [#allocation5]  }
   0xc   : > { %s1927_s24 = scalar_select %p1727_p4, 1, 0 }
   0xd   : > { %s1928_s25 = scalar_select %p1732_p6, 1, 0 }
   0xe   : > { %p1737_p8 = pnand %p1146_p5, %p164_p7  ;;  %s176_s28 = sshll.u32 %s1655_s27, 4  ;;  %s177_s28 = int_to_ptr.vmem [resolvable:$true] %s176_s28 }
   0xf   : > { %s1656_s30 = smov [#allocation7]   ;;  %s1657_s7 = smov [#allocation8]  }
  0x10   : > { %s1929_s26 = scalar_select %p1737_p8, 1, 0 }
  0x11   : > { %p1325_p9 = pneg %p1737_p8  ;;  %s190_s6 = sshll.u32 %s1656_s30, 4  ;;  %s191_s6 = int_to_ptr.vmem [resolvable:$true] %s190_s6 }
  0x12   : > { %s200_s8 = sshll.u32 %s1657_s7, 4  ;;  %s1486_s9 = scalar_lea.vmem %s177_s28, 4096  ;;  %s201_s8 = int_to_ptr.vmem [resolvable:$true] %s200_s8 }
  0x13   : > { %p1745_p10 = pnand %p1325_p9, %p1922_p1  ;;  %p1487_p12 = scmp.ne.s32.totalorder %s177_s28, %s1486_s9 }
  0x14   : > { %p1494_p3 = scmp.lt.s32.totalorder %s177_s28, %s177_s28  ;;  %p1495_p5 = scmp.lt.s32.totalorder %s1486_s9, %s1486_s9 }
  0x15   : > { %p1477_p11 = pneg %p1745_p10 }
  0x16   : > { %p1496_p7 = por %p1495_p5, %p1494_p3 }
  0x17   : > { %p1489_p13 = pnand %p1487_p12, %p1477_p11 }
  0x19   : > { %p1490_p0 = pneg %p1489_p13 }
  0x1b   : > { %p1497_p9 = pnand %p1496_p7, %p1490_p0 }
  0x1d   : > { %1500 = shalt.err (!%p1497_p9)
}
  0x1e   : > { %s1658_s10 = smov 256   ;;  %s1659_s11 = smov 16  }
  0x1f   : > { %1328 = dma.hbm_to_vmem [thread:$0]  (!%p1745_p10), %s1917_s1, 4096, %s177_s28, [#allocation6], %s1658_s10, %s1658_s10, %s1659_s11  }
  0x20   : > { %s1512_s14 = scalar_lea.vmem %s191_s6, 64  ;;  %p1520_p2 = scmp.lt.s32.totalorder %s191_s6, %s191_s6 }
  0x21   : > { %p1513_p1 = scmp.ne.s32.totalorder %s191_s6, %s1512_s14  ;;  %p1521_p6 = scmp.lt.s32.totalorder %s1512_s14, %s1512_s14 }
  0x23   : > { %p1515_p12 = pnand %p1513_p1, %p1477_p11  ;;  %p1522_p3 = por %p1521_p6, %p1520_p2 }
  0x25   : > { %p1516_p13 = pneg %p1515_p12 }
  0x27   : > { %p1523_p0 = pnand %p1522_p3, %p1516_p13 }
  0x29   : > { %1526 = shalt.err (!%p1523_p0)
}
  0x2a   : > { %1331 = dma.hbm_to_vmem [thread:$0]  (!%p1745_p10), %s1918_s2, 64, %s191_s6, [#allocation6]  }
  0x2b   : > { %s1538_s17 = scalar_lea.vmem %s201_s8, 4096  ;;  %p1546_p9 = scmp.lt.s32.totalorder %s201_s8, %s201_s8 }
  0x2c   : > { %p1539_p5 = scmp.ne.s32.totalorder %s201_s8, %s1538_s17  ;;  %p1547_p12 = scmp.lt.s32.totalorder %s1538_s17, %s1538_s17 }
  0x2e   : > { %p1541_p7 = pnand %p1539_p5, %p1477_p11  ;;  %p1548_p4 = por %p1547_p12, %p1546_p9 }
  0x30   : > { %p1542_p1 = pneg %p1541_p7 }
  0x32   : > { %p1549_p2 = pnand %p1548_p4, %p1542_p1 }
  0x34   : > { %1552 = shalt.err (!%p1549_p2)
}
  0x35   : > { %s1924_s23 = smov 64   ;;  %s1661_s27 = smov 4  }
  0x36   : > { %1334 = dma.hbm_to_vmem [thread:$0]  (!%p1745_p10), %s1919_s3, 4096, %s201_s8, [#allocation9], %s1924_s23, %s1924_s23, %s1661_s27  }
  0x37   : > { %s1779_s6 = sadd.s32 1, %s1653_s21   ;;  %s30_s9 = sadd.s32 1, %s1649_s20 }
  0x38   : > { %s27_s7 = ssub.s32 %s1653_s21, %s1779_s6  ;;  %p37_p6 = scmp.ne.s32.totalorder %s1649_s20, %s1645_s19 }
  0x39   : > { %p28_p4 = scmp.eq.s32.totalorder %s27_s7, 0  ;;  %p38_p11 = scmp.eq.s32.totalorder %s1653_s21, 0 }
  0x3a   : > { %p1346_p13 = scmp.lt.s32.totalorder %s1653_s21, 4  ;;  %p1931_p0 = scmp.eq.s32.totalorder %s1718_s22, 3 }
  0x3b   : > { %s1789_s10 = scalar_select %p28_p4, %s1649_s20, %s30_s9  }
  0x3c   : > { %p39_p3 = por %p38_p11, %p37_p6  ;;  %p1793_p5 = por %p1931_p0, %p37_p6 }
  0x3d   : > { %s217_s11 = sand.u32 1, %s1649_s20   ;;  %s1236_s12 = sshll.u32 %s1653_s21, 8 }
  0x3e   : > { %s1932_s29 = scalar_select %p1793_p5, 1, 0 }
  0x3f   : > { %s1151_s8 = sshll.u32 %s217_s11, 4  ;;  %s1802_s15 = scalar_lea.hbm %s1916_s0, %s1236_s12 }
  0x40   : > { %s221_s16 = scalar_lea.vmem [#allocation2], %s1151_s8  ;;  %p1804_p10 = pnand %p1346_p13, %p39_p3 }
  0x41   : > { %s228_s17 = sshll.u32 %s221_s16, 4  ;;  %s1810_s30 = scalar_lea.sflag [#allocation3], %s217_s11  ;;  %s1808_s17 = int_to_ptr.vmem [resolvable:$true] %s228_s17 }
  0x42   : > { %s1553_s7 = scalar_lea.hbm %s1802_s15, 256  ;;  %p1555_p1 = pneg %p1804_p10 }
  0x43   : > { %p1554_p7 = scmp.ne.s32.totalorder %s1802_s15, %s1553_s7  ;;  %s1558_s8 = scalar_lea.hbm %s1916_s0, 1024 }
  0x44   : > { %p1559_p2 = scmp.lt.s32.totalorder %s1802_s15, %s1916_s0  ;;  %p1560_p4 = scmp.lt.s32.totalorder %s1558_s8, %s1553_s7 }
  0x45   : > { %p1556_p9 = pnand %p1555_p1, %p1554_p7 }
  0x46   : > { %p1561_p6 = por %p1560_p4, %p1559_p2 }
  0x47   : > { %p1557_p12 = pneg %p1556_p9 }
  0x49   : > { %p1562_p11 = pnand %p1561_p6, %p1557_p12 }
  0x4b   : > { %1565 = shalt.err (!%p1562_p11)
}
  0x4c   : > { %s1566_s11 = scalar_lea.vmem %s1808_s17, 256  ;;  %s1662_s16 = smov [#allocation2]  }
  0x4d   : > { %p1567_p13 = scmp.ne.s32.totalorder %s1808_s17, %s1566_s11  ;;  %s1571_s23 = sshll.u32 %s1662_s16, 4  ;;  %s1572_s23 = int_to_ptr.vmem [resolvable:$false] %s1571_s23 }
  0x4e   : > { %s1573_s9 = scalar_lea.vmem %s1572_s23, 512  ;;  %p1574_p7 = scmp.lt.s32.totalorder %s1808_s17, %s1572_s23 }
  0x4f   : > { %p1569_p3 = pnand %p1567_p13, %p1555_p1  ;;  %p1575_p9 = scmp.lt.s32.totalorder %s1573_s9, %s1566_s11 }
  0x51   : > { %p1570_p0 = pneg %p1569_p3  ;;  %p1576_p5 = por %p1575_p9, %p1574_p7 }
  0x53   : > { %p1577_p8 = pnand %p1576_p5, %p1570_p0 }
  0x55   : > { %1580 = shalt.err (!%p1577_p8)
}
  0x56   : > { %s1934_s7 = smov 64   ;;  %p1935_p1 = scmp.ne.s32.totalorder %s1929_s26, 0 }
  0x57   : > { %1338 = dma.hbm_to_vmem [thread:$0]  (!%p1804_p10), %s1802_s15, 256, %s1808_s17, %s1810_s30, %s1934_s7, %s1934_s7, %s1661_s27  }
  0x58   : > { %240 = sbr.rel (%p1935_p1) target bundleno = 569 (0x239), region = 40  ;;  %s1837_s12 = sand.u32 (!%p1935_p1), 1, %s1645_s19  }
  0x59   : > { %s1155_s23 = sshll.u32 (!%p1935_p1), %s1837_s12, 4  ;;  %s243_s8 = scalar_lea.sflag (!%p1935_p1), [#allocation3], %s1837_s12 }
  0x5a   : > { %s1843_s28 = scalar_lea.vmem (!%p1935_p1), [#allocation2], %s1155_s23  ;;  %p1936_p8 = scmp.ne.s32.totalorder (!%p1935_p1), %s1927_s24, 0 }
  0x5d   : > { %1624 = dma.done.wait (%p1936_p8), %s243_s8, 256  }
  0x5e   : > { %1626 = vsyncadd (%p1936_p8), %s243_s8, 4294967040  ;;  %p1937_p5 = scmp.eq.s32.totalorder %s1718_s22, 0 }
  0x60   : > { %1628 = dma.done.wait (%p1937_p5), [#allocation6], 4160   ;;  %p1938_p10 = pmov %p1937_p5 }
  0x61   : > { %p1939_p12 = pmov %p1937_p5 }
  0x62   : > { %1630 = vsyncadd (%p1938_p10), [#allocation6], 4294963136 }
  0x63   : > { %1632 = dma.done.wait (%p1939_p12), [#allocation9], 4096   ;;  %p1940_p2 = pmov %p1937_p5 }
  0x64   : > { %v1663_v0 = vmov 0   ;;  %v1393_v1 = vld [vmem:[#allocation5 + $0xe4] ss:$16 sps:$4 sm:$0xff]   ;;  %v1395_v2 = vld [vmem:[#allocation5 + $0xec] ss:$16 sps:$4 sm:$0xff]   ;;  %s284_s27 = scalar_lea.vmem [#allocation10], %s1155_s23 }
  0x65   : > { %1634 = vsyncadd (%p1940_p2), [#allocation9], 4294963200  ;;  %550 = vmatprep.mubr.bf16.mxu0 %v1663_v0  ;;  %603 = vmatprep.mubr.bf16.mxu1 %v1663_v0  ;;  %v1397_v3 = vld [vmem:[#allocation5 + $0xe0] ss:$16 sps:$4 sm:$0xff]   ;;  %v1398_v4 = vld [vmem:[#allocation5 + $0xe8] ss:$16 sps:$4 sm:$0xff]  }
  0x66   : > { %518 = vmatprep.subr.bf16.mxu0 %v1393_v1  ;;  %571 = vmatprep.subr.bf16.mxu1 %v1395_v2  ;;  %v1399_v5 = vld [vmem:[#allocation5 + $0xc4] ss:$16 sps:$4 sm:$0xff]   ;;  %v1401_v6 = vld [vmem:[#allocation5 + $0xcc] ss:$16 sps:$4 sm:$0xff]   ;;  %v1403_v7 = vld [vmem:[#allocation5 + $0xc0] ss:$16 sps:$4 sm:$0xff]  }
  0x67   : > { %519 = vmatpush1.bf16.msra.mxu0 %v1397_v3  ;;  %572 = vmatpush1.bf16.msra.mxu1 %v1398_v4  ;;  %v1404_v8 = vld [vmem:[#allocation5 + $0xc8] ss:$16 sps:$4 sm:$0xff]   ;;  %v1405_v9 = vld [vmem:[#allocation5 + $0xa4] ss:$16 sps:$4 sm:$0xff]   ;;  %v1407_v10 = vld [vmem:[#allocation5 + $0xac] ss:$16 sps:$4 sm:$0xff]   ;;  %v326_v3 = vlaneseq }
  0x68   : > { %520 = vmatprep.subr.bf16.mxu0 %v1399_v5  ;;  %573 = vmatprep.subr.bf16.mxu1 %v1401_v6  ;;  %v1409_v11 = vld [vmem:[#allocation5 + $0xa0] ss:$16 sps:$4 sm:$0xff]   ;;  %v1410_v12 = vld [vmem:[#allocation5 + $0xa8] ss:$16 sps:$4 sm:$0xff]   ;;  %v1411_v13 = vld [vmem:[#allocation5 + $0x84] ss:$16 sps:$4 sm:$0xff]  }
  0x69   : > { %v1413_v14 = vld [vmem:[#allocation5 + $0x8c] ss:$16 sps:$4 sm:$0xff]   ;;  %v1415_v15 = vld [vmem:[#allocation5 + $0x80] ss:$16 sps:$4 sm:$0xff]   ;;  %v1416_v16 = vld [vmem:[#allocation5 + $0x88] ss:$16 sps:$4 sm:$0xff]  }
  0x6a   : > { %v1417_v17 = vld [vmem:[#allocation5 + $0x64] ss:$16 sps:$4 sm:$0xff]   ;;  %v1419_v18 = vld [vmem:[#allocation5 + $0x6c] ss:$16 sps:$4 sm:$0xff]   ;;  %v1421_v19 = vld [vmem:[#allocation5 + $0x60] ss:$16 sps:$4 sm:$0xff]  }
  0x6b   : > { %521 = vmatpush1.bf16.msra.mxu0 %v1403_v7  ;;  %574 = vmatpush1.bf16.msra.mxu1 %v1404_v8  ;;  %v1422_v20 = vld [vmem:[#allocation5 + $0x68] ss:$16 sps:$4 sm:$0xff]   ;;  %v1423_v21 = vld [vmem:[#allocation5 + $0x44] ss:$16 sps:$4 sm:$0xff]   ;;  %v1425_v22 = vld [vmem:[#allocation5 + $0x4c] ss:$16 sps:$4 sm:$0xff]  }
  0x6c   : > { %522 = vmatprep.subr.bf16.mxu0 %v1405_v9  ;;  %575 = vmatprep.subr.bf16.mxu1 %v1407_v10  ;;  %v1427_v23 = vld [vmem:[#allocation5 + $0x40] ss:$16 sps:$4 sm:$0xff]   ;;  %v1428_v24 = vld [vmem:[#allocation5 + $0x48] ss:$16 sps:$4 sm:$0xff]   ;;  %v1429_v25 = vld [vmem:[#allocation5 + $0x24] ss:$16 sps:$4 sm:$0xff]  }
  0x6d   : > { %v1431_v26 = vld [vmem:[#allocation5 + $0x2c] ss:$16 sps:$4 sm:$0xff]   ;;  %v1433_v27 = vld [vmem:[#allocation5 + $0x20] ss:$16 sps:$4 sm:$0xff]   ;;  %v1434_v28 = vld [vmem:[#allocation5 + $0x28] ss:$16 sps:$4 sm:$0xff]  }
  0x6e   : > { %v1435_v29 = vld [vmem:[#allocation5 + $0x4] ss:$16 sps:$4 sm:$0xff]   ;;  %v1437_v30 = vld [vmem:[#allocation5 + $0xc] ss:$16 sps:$4 sm:$0xff]   ;;  %v1439_v31 = vld [vmem:[#allocation5] ss:$16 sps:$4 sm:$0xff]  }
  0x6f   : > { %523 = vmatpush1.bf16.msra.mxu0 %v1409_v11  ;;  %576 = vmatpush1.bf16.msra.mxu1 %v1410_v12  ;;  %v1440_v32 = vld [vmem:[#allocation5 + $0x8] ss:$16 sps:$4 sm:$0xff]   ;;  %v1443_v33 = vld [vmem:[#allocation8 + $0x78] sm:$0xff]   ;;  %v1451_v43 = vld [vmem:[#allocation8 + $0x68] sm:$0xff]   ;;  %v327_v4 = vshrl.u32 %v326_v3, 7  ;;  %s1043_s15 = sshll.u32 %s284_s27, 4  ;;  %s1869_s15 = int_to_ptr.vmem [resolvable:$true] %s1043_s15 }
  0x70   : > { %524 = vmatprep.subr.bf16.mxu0 %v1411_v13  ;;  %577 = vmatprep.subr.bf16.mxu1 %v1413_v14  ;;  %v1444_v34 = vld [vmem:[#allocation8 + $0xf8] sm:$0xff]   ;;  %v1447_v38 = vld [vmem:[#allocation8 + $0x70] sm:$0xff]   ;;  %v1452_v44 = vld [vmem:[#allocation8 + $0xe8] sm:$0xff]   ;;  %s1241_s17 = sshll.u32 %s1718_s22, 8  ;;  %s1030_s11 = scalar_lea.sflag [#allocation4], %s1837_s12 }
  0x71   : > { %v1441_v35 = vld [vmem:[%s1843_s28] sm:$0xff]   ;;  %v1442_v42 = vld [vmem:[%s1843_s28 + $0x8] sm:$0xff]   ;;  %v332_v5 = vsub.s32 1, %v327_v4  ;;  %v340_v6 = vsub.s32 3, %v327_v4  ;;  %v328_v7 = vsub.s32 0, %v327_v4  ;;  %v336_v8 = vsub.s32 2, %v327_v4  ;;  %s1874_s14 = scalar_lea.hbm %s1921_s5, %s1241_s17 }
  0x72   : > { %v1445_v36 = vld [vmem:[#allocation8 + $0x38] sm:$0xff]   ;;  %v1448_v39 = vld [vmem:[#allocation8 + $0xf0] sm:$0xff]   ;;  %v1453_v45 = vld [vmem:[#allocation8 + $0x28] sm:$0xff]   ;;  %s1581_s16 = scalar_lea.vmem %s1869_s15, 256  ;;  %p1941_p6 = scmp.ne.s32.totalorder %s1932_s29, 0 }
  0x73   : > { %525 = vmatpush1.bf16.msra.mxu0 %v1415_v15  ;;  %578 = vmatpush1.bf16.msra.mxu1 %v1416_v16  ;;  %v1446_v37 = vld [vmem:[#allocation8 + $0xb8] sm:$0xff]   ;;  %v1449_v40 = vld [vmem:[#allocation8 + $0x30] sm:$0xff]   ;;  %v1454_v46 = vld [vmem:[#allocation8 + $0xa8] sm:$0xff]   ;;  %p1582_p4 = scmp.ne.s32.totalorder %s1869_s15, %s1581_s16  ;;  %s1664_s22 = smov [#allocation10]  }
  0x74   : > { %526 = vmatprep.subr.bf16.mxu0 %v1417_v17  ;;  %579 = vmatprep.subr.bf16.mxu1 %v1419_v18  ;;  %v1450_v41 = vld [vmem:[#allocation8 + $0xb0] sm:$0xff]   ;;  %v1455_v47 = vld [vmem:[#allocation8 + $0x60] sm:$0xff]   ;;  %v1459_v51 = vld [vmem:[#allocation8 + $0x58] sm:$0xff]   ;;  %s1585_s9 = sshll.u32 %s1664_s22, 4  ;;  %s1586_s9 = int_to_ptr.vmem [resolvable:$false] %s1585_s9 }
  0x75   : > { %v1456_v48 = vld [vmem:[#allocation8 + $0xe0] sm:$0xff]   ;;  %v1460_v52 = vld [vmem:[#allocation8 + $0xd8] sm:$0xff]   ;;  %v1463_v55 = vld [vmem:[#allocation8 + $0x50] sm:$0xff]   ;;  %p1583_p11 = pnand %p1582_p4, %p1941_p6  ;;  %s1587_s7 = scalar_lea.vmem %s1586_s9, 512 }
  0x76   : > { %v1457_v49 = vld [vmem:[#allocation8 + $0x20] sm:$0xff]   ;;  %v1461_v53 = vld [vmem:[#allocation8 + $0x18] sm:$0xff]   ;;  %v1464_v56 = vld [vmem:[#allocation8 + $0xd0] sm:$0xff]   ;;  %p1588_p3 = scmp.lt.s32.totalorder %s1869_s15, %s1586_s9  ;;  %p1589_p0 = scmp.lt.s32.totalorder %s1587_s7, %s1581_s16 }
  0x77   : > { %527 = vmatpush1.bf16.msra.mxu0 %v1421_v19  ;;  %580 = vmatpush1.bf16.msra.mxu1 %v1422_v20  ;;  %v1458_v50 = vld [vmem:[#allocation8 + $0xa0] sm:$0xff]   ;;  %v1462_v54 = vld [vmem:[#allocation8 + $0x98] sm:$0xff]   ;;  %v1465_v57 = vld [vmem:[#allocation8 + $0x10] sm:$0xff]   ;;  %p1584_p13 = pneg %p1583_p11 }
  0x78   : > { %528 = vmatprep.subr.bf16.mxu0 %v1423_v21  ;;  %581 = vmatprep.subr.bf16.mxu1 %v1425_v22  ;;  %v1466_v58 = vld [vmem:[#allocation8 + $0x90] sm:$0xff]   ;;  %v1467_v59 = vld [vmem:[#allocation8 + $0x48] sm:$0xff]   ;;  %v1471_v63 = vld [vmem:[#allocation8 + $0x40] sm:$0xff]   ;;  %p1590_p7 = por %p1589_p0, %p1588_p3 }
  0x79   : > { %v1468_v60 = vld [vmem:[#allocation8 + $0xc8] sm:$0xff]   ;;  %v1473_v1 = vld [vmem:[#allocation8] sm:$0xff]   ;;  %v324_v9 = vld [vmem:[#allocation7] sm:$0xf] }
  0x7a   : > { %v1469_v61 = vld [vmem:[#allocation8 + $0x8] sm:$0xff]   ;;  %v1474_v2 = vld [vmem:[#allocation8 + $0x80] sm:$0xff]   ;;  %v333_v12 = vrot.slane %v324_v9, %v332_v5  ;;  %v341_v13 = vrot.slane %v324_v9, %v340_v6  ;;  %v329_v14 = vrot.slane %v324_v9, %v328_v7  ;;  %v337_v15 = vrot.slane %v324_v9, %v336_v8  ;;  %p1591_p9 = pnand %p1590_p7, %p1584_p13 }
  0x7b   : > { %529 = vmatpush1.bf16.msra.mxu0 %v1427_v23  ;;  %582 = vmatpush1.bf16.msra.mxu1 %v1428_v24  ;;  %v1470_v62 = vld [vmem:[#allocation8 + $0x88] sm:$0xff]  }
  0x7c   : > { %530 = vmatprep.subr.bf16.mxu0 %v1429_v25  ;;  %583 = vmatprep.subr.bf16.mxu1 %v1431_v26 }
  0x7f   : > { %531 = vmatpush1.bf16.msra.mxu0 %v1433_v27  ;;  %584 = vmatpush1.bf16.msra.mxu1 %v1434_v28 }
  0x80   : > { %532 = vmatprep.subr.bf16.mxu0 %v1435_v29  ;;  %585 = vmatprep.subr.bf16.mxu1 %v1437_v30 }
  0x83   : > { %533 = vmatpush1.bf16.msra.mxu0 %v1439_v31  ;;  %586 = vmatpush1.bf16.msra.mxu1 %v1440_v32 }
  0x84   : > { %1253 = vmatprep.subr.bf16.mxu0 %v1443_v33  ;;  %1281 = vmatprep.subr.bf16.mxu1 %v1444_v34 }
  0x86   : > { %551 = vmatmul.mubr.bf16.vlgmr.msra.gmra.mxu0 %v1441_v35  ;;  %604 = vmatmul.mubr.bf16.vlgmr.msra.gmra.mxu1 %v1441_v35 }
  0x87   : > { %560 = vmatprep.mubr.bf16.mxu0 %v1663_v0  ;;  %613 = vmatprep.mubr.bf16.mxu1 %v1663_v0  ;;  %v1472_v0 = vld [vmem:[#allocation8 + $0xc0] sm:$0xff]  }
  0x88   : > { %1254 = vmatpush3.bf16.msra.mxu0 %v1445_v36  ;;  %1282 = vmatpush3.bf16.msra.mxu1 %v1446_v37 }
  0x89   : > { %1255 = vmatprep.subr.bf16.mxu0 %v1447_v38  ;;  %1283 = vmatprep.subr.bf16.mxu1 %v1448_v39 }
  0x8c   : > { %1256 = vmatpush3.bf16.msra.mxu0 %v1449_v40  ;;  %1284 = vmatpush3.bf16.msra.mxu1 %v1450_v41 }
  0x8d   : > { %1257 = vmatprep.subr.bf16.mxu0 %v1451_v43  ;;  %1285 = vmatprep.subr.bf16.mxu1 %v1452_v44 }
  0x8e   : > { %561 = vmatmul.mubr.bf16.gmra.mxu0 %v1442_v42  ;;  %614 = vmatmul.mubr.bf16.gmra.mxu1 %v1442_v42 }
  0x90   : > { %1258 = vmatpush3.bf16.msra.mxu0 %v1453_v45  ;;  %1286 = vmatpush3.bf16.msra.mxu1 %v1454_v46 }
  0x91   : > { %1259 = vmatprep.subr.bf16.mxu0 %v1455_v47  ;;  %1287 = vmatprep.subr.bf16.mxu1 %v1456_v48 }
  0x94   : > { %1260 = vmatpush3.bf16.msra.mxu0 %v1457_v49  ;;  %1288 = vmatpush3.bf16.msra.mxu1 %v1458_v50 }
  0x95   : > { %1261 = vmatprep.subr.bf16.mxu0 %v1459_v51  ;;  %1289 = vmatprep.subr.bf16.mxu1 %v1460_v52 }
  0x98   : > { %1262 = vmatpush3.bf16.msra.mxu0 %v1461_v53  ;;  %1290 = vmatpush3.bf16.msra.mxu1 %v1462_v54 }
  0x99   : > { %1263 = vmatprep.subr.bf16.mxu0 %v1463_v55  ;;  %1291 = vmatprep.subr.bf16.mxu1 %v1464_v56 }
  0x9c   : > { %1264 = vmatpush3.bf16.msra.mxu0 %v1465_v57  ;;  %1292 = vmatpush3.bf16.msra.mxu1 %v1466_v58 }
  0x9d   : > { %1265 = vmatprep.subr.bf16.mxu0 %v1467_v59  ;;  %1293 = vmatprep.subr.bf16.mxu1 %v1468_v60 }
  0xa0   : > { %1266 = vmatpush3.bf16.msra.mxu0 %v1469_v61  ;;  %1294 = vmatpush3.bf16.msra.mxu1 %v1470_v62 }
  0xa1   : > { %1267 = vmatprep.subr.bf16.mxu0 %v1471_v63  ;;  %1295 = vmatprep.subr.bf16.mxu1 %v1472_v0 }
  0xa4   : > { %1268 = vmatpush3.bf16.msra.mxu0 %v1473_v1  ;;  %1296 = vmatpush3.bf16.msra.mxu1 %v1474_v2 }
 0x146   : > { %v552_v10 = vpop.f32.mrf.mxu0  ;;  %v605_v11 = vpop.f32.mrf.mxu1 }
 0x147   : > { %v553_v24 = vadd.f32 %v552_v10, %v329_v14  ;;  %v606_v25 = vadd.f32 %v605_v11, %v337_v15  ;;  %v1194_v11 = vld [vmem:[%s1920_s4] ss:$0 sm:$0xff] }
 0x148   : > { %v554_v16 = vpop.f32.mrf.mxu0  ;;  %v607_v17 = vpop.f32.mrf.mxu1 }
 0x149   : > { %v555_v20 = vadd.f32 %v554_v16, %v333_v12  ;;  %v608_v21 = vadd.f32 %v607_v17, %v341_v13  ;;  %v624_v38 = vmax.f32 %v553_v24, 0.0  ;;  %v626_v39 = vmax.f32 %v606_v25, 0.0 }
 0x14a   : > { %v556_v18 = vpop.f32.mrf.mxu0  ;;  %v609_v19 = vpop.f32.mrf.mxu1 }
 0x14b   : > { %v557_v22 = vadd.f32 %v556_v18, %v329_v14  ;;  %v610_v23 = vadd.f32 %v609_v19, %v337_v15  ;;  %v625_v34 = vmax.f32 %v555_v20, 0.0  ;;  %v627_v35 = vmax.f32 %v608_v21, 0.0 }
 0x14c   : > { %v558_v26 = vpop.f32.mrf.mxu0  ;;  %v611_v27 = vpop.f32.mrf.mxu1 }
 0x14d   : > { %v559_v28 = vadd.f32 %v558_v26, %v333_v12  ;;  %v612_v29 = vadd.f32 %v611_v27, %v341_v13  ;;  %v628_v30 = vmax.f32 %v557_v22, 0.0  ;;  %v630_v31 = vmax.f32 %v610_v23, 0.0 }
 0x14e   : > { %v562_v32 = vpop.f32.mrf.mxu0  ;;  %v615_v33 = vpop.f32.mrf.mxu1 }
 0x14f   : > { %v629_v36 = vmax.f32 %v559_v28, 0.0  ;;  %v631_v37 = vmax.f32 %v612_v29, 0.0  ;;  %v640_v44 = vpack.c.bf16 %v628_v30, %v624_v38  ;;  %v642_v45 = vpack.c.bf16 %v630_v31, %v626_v39 }
 0x150   : > { %v564_v40 = vpop.f32.mrf.mxu0  ;;  %v617_v41 = vpop.f32.mrf.mxu1  ;;  %v563_v52 = vadd.f32 %v562_v32, %v329_v14  ;;  %v616_v53 = vadd.f32 %v615_v33, %v337_v15 }
 0x151   : > { %v641_v42 = vpack.c.bf16 %v629_v36, %v625_v34  ;;  %v643_v43 = vpack.c.bf16 %v631_v37, %v627_v35  ;;  %v565_v46 = vadd.f32 %v564_v40, %v333_v12  ;;  %v618_v49 = vadd.f32 %v617_v41, %v341_v13 }
 0x152   : > { %v566_v47 = vpop.f32.mrf.mxu0  ;;  %v619_v48 = vpop.f32.mrf.mxu1  ;;  %v632_v0 = vmax.f32 %v563_v52, 0.0  ;;  %v634_v1 = vmax.f32 %v616_v53, 0.0 }
 0x153   : > { %v567_v50 = vadd.f32 %v566_v47, %v329_v14  ;;  %v620_v51 = vadd.f32 %v619_v48, %v337_v15  ;;  %943 = vmatprep.mubr.bf16.mxu0 %v641_v42  ;;  %992 = vmatprep.mubr.bf16.mxu1 %v643_v43  ;;  %v633_v60 = vmax.f32 %v565_v46, 0.0  ;;  %v635_v61 = vmax.f32 %v618_v49, 0.0 }
 0x154   : > { %v568_v54 = vpop.f32.mrf.mxu0  ;;  %v621_v55 = vpop.f32.mrf.mxu1  ;;  %944 = vmatmul.mubr.bf16.vlgmr.msra.gmra.mxu0 %v640_v44  ;;  %993 = vmatmul.mubr.bf16.vlgmr.msra.gmra.mxu1 %v642_v45 }
 0x155   : > { %v569_v56 = vadd.f32 %v568_v54, %v333_v12  ;;  %v622_v57 = vadd.f32 %v621_v55, %v341_v13  ;;  %v636_v58 = vmax.f32 %v567_v50, 0.0  ;;  %v638_v59 = vmax.f32 %v620_v51, 0.0 }
 0x157   : > { %v637_v62 = vmax.f32 %v569_v56, 0.0  ;;  %v639_v63 = vmax.f32 %v622_v57, 0.0  ;;  %v644_v4 = vpack.c.bf16 %v636_v58, %v632_v0  ;;  %v646_v5 = vpack.c.bf16 %v638_v59, %v634_v1 }
 0x159   : > { %v645_v2 = vpack.c.bf16 %v637_v62, %v633_v60  ;;  %v647_v3 = vpack.c.bf16 %v639_v63, %v635_v61 }
 0x15b   : > { %951 = vmatprep.mubr.bf16.mxu0 %v645_v2  ;;  %1000 = vmatprep.mubr.bf16.mxu1 %v647_v3 }
 0x15c   : > { %952 = vmatmul.mubr.bf16.gmra.mxu0 %v644_v4  ;;  %1001 = vmatmul.mubr.bf16.gmra.mxu1 %v646_v5 }
 0x214   : > { %v1269_v6 = vpop.f32.mrf.mxu0  ;;  %v1297_v7 = vpop.f32.mrf.mxu1 }
 0x216   : > { %v1270_v8 = vpop.f32.mrf.mxu0  ;;  %v1298_v9 = vpop.f32.mrf.mxu1 }
 0x217   : > { %v1271_v10 = vadd.f32 %v1270_v8, %v1269_v6  ;;  %v1299_v20 = vadd.f32 %v1298_v9, %v1297_v7 }
 0x218   : > { %v1272_v12 = vpop.f32.mrf.mxu0  ;;  %v1300_v13 = vpop.f32.mrf.mxu1 }
 0x219   : > { %v946_v16 = vadd.f32 %v1271_v10, %v1194_v11 }
 0x21a   : > { %v1273_v14 = vpop.f32.mrf.mxu0  ;;  %v1301_v15 = vpop.f32.mrf.mxu1 }
 0x21b   : > { %v1274_v17 = vadd.f32 %v1273_v14, %v1272_v12  ;;  %v1302_v22 = vadd.f32 %v1301_v15, %v1300_v13  ;;  %v995_v25 = vadd.f32 %v1299_v20, %v946_v16 }
 0x21c   : > { %v1275_v18 = vpop.f32.mrf.mxu0  ;;  %v1303_v19 = vpop.f32.mrf.mxu1 }
 0x21d   : > { %v949_v21 = vadd.f32 %v1274_v17, %v1194_v11 }
 0x21e   : > { %v1276_v23 = vpop.f32.mrf.mxu0  ;;  %v1304_v24 = vpop.f32.mrf.mxu1 }
 0x21f   : > { %v998_v26 = vadd.f32 %v1302_v22, %v949_v21  ;;  %v1277_v27 = vadd.f32 %v1276_v23, %v1275_v18  ;;  %v1305_v35 = vadd.f32 %v1304_v24, %v1303_v19 }
 0x220   : > { %v1278_v28 = vpop.f32.mrf.mxu0  ;;  %v1306_v29 = vpop.f32.mrf.mxu1 }
 0x221   : > { %v1245_v30 = vpack.c.bf16 %v998_v26, %v995_v25  ;;  %v954_v33 = vadd.f32 %v1277_v27, %v1194_v11 }
 0x222   : > { %v1279_v31 = vpop.f32.mrf.mxu0  ;;  %v1307_v32 = vpop.f32.mrf.mxu1 }
 0x223   : > { %1246 = vst [vmem:[%s284_s27] sm:$0xff] %v1245_v30   ;;  %v1280_v34 = vadd.f32 %v1279_v31, %v1278_v28  ;;  %v1308_v37 = vadd.f32 %v1307_v32, %v1306_v29  ;;  %v1003_v38 = vadd.f32 %v1305_v35, %v954_v33 }
 0x225   : > { %v957_v36 = vadd.f32 %v1280_v34, %v1194_v11 }
 0x227   : > { %v1006_v39 = vadd.f32 %v1308_v37, %v957_v36 }
 0x229   : > { %v1250_v40 = vpack.c.bf16 %v1006_v39, %v1003_v38 }
 0x22b   : > { %1252 = vst [vmem:[%s284_s27 + $0x8] sm:$0xff] %v1250_v40  }
 0x22c   : > { %1594 = shalt.err (!%p1591_p9)
}
 0x22d   : > { %s1595_s23 = scalar_lea.hbm %s1874_s14, 256  ;;  %s1599_s24 = scalar_lea.hbm %s1921_s5, 1024 }
 0x22e   : > { %p1596_p1 = scmp.ne.s32.totalorder %s1874_s14, %s1595_s23  ;;  %p1600_p10 = scmp.lt.s32.totalorder %s1874_s14, %s1921_s5 }
 0x22f   : > { %p1601_p12 = scmp.lt.s32.totalorder %s1599_s24, %s1595_s23 }
 0x230   : > { %p1597_p8 = pnand %p1596_p1, %p1941_p6 }
 0x231   : > { %p1602_p2 = por %p1601_p12, %p1600_p10 }
 0x232   : > { %p1598_p5 = pneg %p1597_p8 }
 0x234   : > { %p1603_p4 = pnand %p1602_p2, %p1598_p5 }
 0x236   : > { %1606 = shalt.err (!%p1603_p4)
}
 0x237   : > { %s1665_s17 = smov 64   ;;  %s1666_s30 = smov 4  }
 0x238   : > { %1323 = dma.vmem_to_hbm [thread:$0]  (%p1941_p6), %s1869_s15, 256, %s1874_s14, %s1030_s11, %s1665_s17, %s1665_s17, %s1666_s30  }
 0x239 PF: > { %p1350_p11 = scmp.ge.s32.totalorder %s1653_s21, 2  ;;  %s1058_s13 = sand.u32 1, %s1641_s18  }
 0x23a   : > { %p1942_p13 = scmp.ne.s32.totalorder %s1928_s25, 0  ;;  %s1059_s16 = scalar_lea.sflag [#allocation4], %s1058_s13 }
 0x23c   : > { %p1340_p3 = pnand %p1350_p11, %p1942_p13 }
 0x23e   : > { %p1341_p0 = pneg %p1340_p3 }
 0x240   : > { %1636 = dma.done.wait (%p1341_p0), %s1059_s16, 256  }
 0x241   : > { %1638 = vsyncadd (%p1341_p0), %s1059_s16, 4294967040  ;;  %p20_p7 = scmp.ge.s32.totalorder %s1779_s6, 6   ;;  %s1943_s18 = smov %s1645_s19 }
 0x242   : > { %s1944_s19 = smov %s1649_s20  ;;  %s1945_s20 = smov %s1789_s10 }
 0x243   : > { %s1946_s21 = smov %s1779_s6  ;;  %22 = sbr.rel (!%p20_p7) target bundleno = 7 (0x7), region = 97 }
 0x248   :  { %1064 = vsyncpa [#allocation3], 1 }
 0x249   :  { %1066 = vsyncpa [#allocation3 + $0x1], 1 }
 0x24a   :  { %1067 = vsyncpa [#allocation6], 1 }
 0x24b   :  { %1068 = vsyncpa [#allocation9], 1 }
 0x24c   :  { %1069 = vsyncpa [#allocation4], 1 }
 0x24d   :  { %1071 = vsyncpa [#allocation4 + $0x1], 1 }

// kernel: tpu_custom_call.1
= control target key start
LH: loop header
LB: loop body
LE: loop exit
PB: predicated region body
PF: predicated region fallthrough
CT: control target
= control target key end

     0   :  { %10 = vsyncpa [#allocation3], 0  ;;  %s1916_s0 = inlined_call_operand.hbm [shape: bf16[128,128], index: 0, kind: input, shape index: {}]   ;;  %s1917_s1 = inlined_call_operand.hbm [shape: bf16[128,512], index: 1, kind: input, shape index: {}]   ;;  %s1918_s2 = inlined_call_operand.hbm [shape: f32[1,512], index: 2, kind: input, shape index: {}]   ;;  %s1919_s3 = inlined_call_operand.hbm [shape: bf16[512,128], index: 3, kind: input, shape index: {}]   ;;  %s1920_s4 = inlined_call_operand.vmem [shape: f32[1,128], index: 4, kind: input, shape index: {}]   ;;  %s1921_s5 = inlined_call_operand.hbm [shape: bf16[128,128], index: 5, kind: output, shape index: {}]  }
   0x1   :  { %12 = vsyncpa [#allocation3 + $0x1], 0 }
   0x2   :  { %13 = vsyncpa [#allocation6], 0 }
   0x3   :  { %14 = vsyncpa [#allocation9], 0 }
   0x4   :  { %15 = vsyncpa [#allocation4], 0 }
   0x5   :  { %17 = vsyncpa [#allocation4 + $0x1], 0  ;;  %s1697_s18 = smov 0   ;;  %s1699_s19 = smov 0  }
   0x6   :  { %s1701_s20 = smov 0   ;;  %s1703_s21 = smov 0  }
   0x7 LB: > { %s1718_s22 = sadd.s32 4294967295, %s1653_s21   ;;  %s1145_s23 = sadd.s32 4294967294, %s1653_s21   ;;  %s1653_s21 = sphi %s1703_s21, %s1946_s21   ;;  %s1649_s20 = sphi %s1701_s20, %s1945_s20   ;;  %s1645_s19 = sphi %s1699_s19, %s1944_s19   ;;  %s1641_s18 = sphi %s1697_s18, %s1943_s18  }
   0x8   : > { %p43_p0 = scmp.ne.s32.totalorder %s1645_s19, %s1641_s18  ;;  %p1922_p1 = scmp.eq.s32.totalorder %s1718_s22, 0 }
   0x9   : > { %p157_p3 = scmp.eq.s32.totalorder %s1145_s23, 3  ;;  %p1146_p5 = scmp.ge.s32.totalorder %s1653_s21, 1 }
   0xa   : > { %p1727_p4 = por %p1922_p1, %p43_p0  ;;  %p164_p7 = scmp.lt.s32.totalorder %s1653_s21, 5 }
   0xb   : > { %p1732_p6 = por %p157_p3, %p43_p0  ;;  %s1655_s27 = smov [#allocation5]  }
   0xc   : > { %s1927_s24 = scalar_select %p1727_p4, 1, 0 }
   0xd   : > { %s1928_s25 = scalar_select %p1732_p6, 1, 0 }
   0xe   : > { %p1737_p8 = pnand %p1146_p5, %p164_p7  ;;  %s176_s28 = sshll.u32 %s1655_s27, 4  ;;  %s177_s28 = int_to_ptr.vmem [resolvable:$true] %s176_s28 }
   0xf   : > { %s1656_s30 = smov [#allocation7]   ;;  %s1657_s7 = smov [#allocation8]  }
  0x10   : > { %s1929_s26 = scalar_select %p1737_p8, 1, 0 }
  0x11   : > { %p1325_p9 = pneg %p1737_p8  ;;  %s190_s6 = sshll.u32 %s1656_s30, 4  ;;  %s191_s6 = int_to_ptr.vmem [resolvable:$true] %s190_s6 }
  0x12   : > { %s200_s8 = sshll.u32 %s1657_s7, 4  ;;  %s1486_s9 = scalar_lea.vmem %s177_s28, 4096  ;;  %s201_s8 = int_to_ptr.vmem [resolvable:$true] %s200_s8 }
  0x13   : > { %p1745_p10 = pnand %p1325_p9, %p1922_p1  ;;  %p1487_p12 = scmp.ne.s32.totalorder %s177_s28, %s1486_s9 }
  0x14   : > { %p1494_p3 = scmp.lt.s32.totalorder %s177_s28, %s177_s28  ;;  %p1495_p5 = scmp.lt.s32.totalorder %s1486_s9, %s1486_s9 }
  0x15   : > { %p1477_p11 = pneg %p1745_p10 }
  0x16   : > { %p1496_p7 = por %p1495_p5, %p1494_p3 }
  0x17   : > { %p1489_p13 = pnand %p1487_p12, %p1477_p11 }
  0x19   : > { %p1490_p0 = pneg %p1489_p13 }
  0x1b   : > { %p1497_p9 = pnand %p1496_p7, %p1490_p0 }
  0x1d   : > { %1500 = shalt.err (!%p1497_p9)
}
  0x1e   : > { %s1658_s10 = smov 256   ;;  %s1659_s11 = smov 16  }
  0x1f   : > { %1328 = dma.hbm_to_vmem [thread:$0]  (!%p1745_p10), %s1917_s1, 4096, %s177_s28, [#allocation6], %s1658_s10, %s1658_s10, %s1659_s11  }
  0x20   : > { %s1512_s14 = scalar_lea.vmem %s191_s6, 64  ;;  %p1520_p2 = scmp.lt.s32.totalorder %s191_s6, %s191_s6 }
  0x21   : > { %p1513_p1 = scmp.ne.s32.totalorder %s191_s6, %s1512_s14  ;;  %p1521_p6 = scmp.lt.s32.totalorder %s1512_s14, %s1512_s14 }
  0x23   : > { %p1515_p12 = pnand %p1513_p1, %p1477_p11  ;;  %p1522_p3 = por %p1521_p6, %p1520_p2 }
  0x25   : > { %p1516_p13 = pneg %p1515_p12 }
  0x27   : > { %p1523_p0 = pnand %p1522_p3, %p1516_p13 }
  0x29   : > { %1526 = shalt.err (!%p1523_p0)
}
  0x2a   : > { %1331 = dma.hbm_to_vmem [thread:$0]  (!%p1745_p10), %s1918_s2, 64, %s191_s6, [#allocation6]  }
  0x2b   : > { %s1538_s17 = scalar_lea.vmem %s201_s8, 4096  ;;  %p1546_p9 = scmp.lt.s32.totalorder %s201_s8, %s201_s8 }
  0x2c   : > { %p1539_p5 = scmp.ne.s32.totalorder %s201_s8, %s1538_s17  ;;  %p1547_p12 = scmp.lt.s32.totalorder %s1538_s17, %s1538_s17 }
  0x2e   : > { %p1541_p7 = pnand %p1539_p5, %p1477_p11  ;;  %p1548_p4 = por %p1547_p12, %p1546_p9 }
  0x30   : > { %p1542_p1 = pneg %p1541_p7 }
  0x32   : > { %p1549_p2 = pnand %p1548_p4, %p1542_p1 }
  0x34   : > { %1552 = shalt.err (!%p1549_p2)
}
  0x35   : > { %s1924_s23 = smov 64   ;;  %s1661_s27 = smov 4  }
  0x36   : > { %1334 = dma.hbm_to_vmem [thread:$0]  (!%p1745_p10), %s1919_s3, 4096, %s201_s8, [#allocation9], %s1924_s23, %s1924_s23, %s1661_s27  }
  0x37   : > { %s1779_s6 = sadd.s32 1, %s1653_s21   ;;  %s30_s9 = sadd.s32 1, %s1649_s20 }
  0x38   : > { %s27_s7 = ssub.s32 %s1653_s21, %s1779_s6  ;;  %p37_p6 = scmp.ne.s32.totalorder %s1649_s20, %s1645_s19 }
  0x39   : > { %p28_p4 = scmp.eq.s32.totalorder %s27_s7, 0  ;;  %p38_p11 = scmp.eq.s32.totalorder %s1653_s21, 0 }
  0x3a   : > { %p1346_p13 = scmp.lt.s32.totalorder %s1653_s21, 4  ;;  %p1931_p0 = scmp.eq.s32.totalorder %s1718_s22, 3 }
  0x3b   : > { %s1789_s10 = scalar_select %p28_p4, %s1649_s20, %s30_s9  }
  0x3c   : > { %p39_p3 = por %p38_p11, %p37_p6  ;;  %p1793_p5 = por %p1931_p0, %p37_p6 }
  0x3d   : > { %s217_s11 = sand.u32 1, %s1649_s20   ;;  %s1236_s12 = sshll.u32 %s1653_s21, 8 }
  0x3e   : > { %s1932_s29 = scalar_select %p1793_p5, 1, 0 }
  0x3f   : > { %s1151_s8 = sshll.u32 %s217_s11, 4  ;;  %s1802_s15 = scalar_lea.hbm %s1916_s0, %s1236_s12 }
  0x40   : > { %s221_s16 = scalar_lea.vmem [#allocation2], %s1151_s8  ;;  %p1804_p10 = pnand %p1346_p13, %p39_p3 }
  0x41   : > { %s228_s17 = sshll.u32 %s221_s16, 4  ;;  %s1810_s30 = scalar_lea.sflag [#allocation3], %s217_s11  ;;  %s1808_s17 = int_to_ptr.vmem [resolvable:$true] %s228_s17 }
  0x42   : > { %s1553_s7 = scalar_lea.hbm %s1802_s15, 256  ;;  %p1555_p1 = pneg %p1804_p10 }
  0x43   : > { %p1554_p7 = scmp.ne.s32.totalorder %s1802_s15, %s1553_s7  ;;  %s1558_s8 = scalar_lea.hbm %s1916_s0, 1024 }
  0x44   : > { %p1559_p2 = scmp.lt.s32.totalorder %s1802_s15, %s1916_s0  ;;  %p1560_p4 = scmp.lt.s32.totalorder %s1558_s8, %s1553_s7 }
  0x45   : > { %p1556_p9 = pnand %p1555_p1, %p1554_p7 }
  0x46   : > { %p1561_p6 = por %p1560_p4, %p1559_p2 }
  0x47   : > { %p1557_p12 = pneg %p1556_p9 }
  0x49   : > { %p1562_p11 = pnand %p1561_p6, %p1557_p12 }
  0x4b   : > { %1565 = shalt.err (!%p1562_p11)
}
  0x4c   : > { %s1566_s11 = scalar_lea.vmem %s1808_s17, 256  ;;  %s1662_s16 = smov [#allocation2]  }
  0x4d   : > { %p1567_p13 = scmp.ne.s32.totalorder %s1808_s17, %s1566_s11  ;;  %s1571_s23 = sshll.u32 %s1662_s16, 4  ;;  %s1572_s23 = int_to_ptr.vmem [resolvable:$false] %s1571_s23 }
  0x4e   : > { %s1573_s9 = scalar_lea.vmem %s1572_s23, 512  ;;  %p1574_p7 = scmp.lt.s32.totalorder %s1808_s17, %s1572_s23 }
  0x4f   : > { %p1569_p3 = pnand %p1567_p13, %p1555_p1  ;;  %p1575_p9 = scmp.lt.s32.totalorder %s1573_s9, %s1566_s11 }
  0x51   : > { %p1570_p0 = pneg %p1569_p3  ;;  %p1576_p5 = por %p1575_p9, %p1574_p7 }
  0x53   : > { %p1577_p8 = pnand %p1576_p5, %p1570_p0 }
  0x55   : > { %1580 = shalt.err (!%p1577_p8)
}
  0x56   : > { %s1934_s7 = smov 64   ;;  %p1935_p1 = scmp.ne.s32.totalorder %s1929_s26, 0 }
  0x57   : > { %1338 = dma.hbm_to_vmem [thread:$0]  (!%p1804_p10), %s1802_s15, 256, %s1808_s17, %s1810_s30, %s1934_s7, %s1934_s7, %s1661_s27  }
  0x58   : > { %240 = sbr.rel (%p1935_p1) target bundleno = 569 (0x239), region = 40  ;;  %s1837_s12 = sand.u32 (!%p1935_p1), 1, %s1645_s19  }
  0x59   : > { %s1155_s23 = sshll.u32 (!%p1935_p1), %s1837_s12, 4  ;;  %s243_s8 = scalar_lea.sflag (!%p1935_p1), [#allocation3], %s1837_s12 }
  0x5a   : > { %s1843_s28 = scalar_lea.vmem (!%p1935_p1), [#allocation2], %s1155_s23  ;;  %p1936_p8 = scmp.ne.s32.totalorder (!%p1935_p1), %s1927_s24, 0 }
  0x5d   : > { %1624 = dma.done.wait (%p1936_p8), %s243_s8, 256  }
  0x5e   : > { %1626 = vsyncadd (%p1936_p8), %s243_s8, 4294967040  ;;  %p1937_p5 = scmp.eq.s32.totalorder %s1718_s22, 0 }
  0x60   : > { %1628 = dma.done.wait (%p1937_p5), [#allocation6], 4160   ;;  %p1938_p10 = pmov %p1937_p5 }
  0x61   : > { %p1939_p12 = pmov %p1937_p5 }
  0x62   : > { %1630 = vsyncadd (%p1938_p10), [#allocation6], 4294963136 }
  0x63   : > { %1632 = dma.done.wait (%p1939_p12), [#allocation9], 4096   ;;  %p1940_p2 = pmov %p1937_p5 }
  0x64   : > { %v1663_v0 = vmov 0   ;;  %v1393_v1 = vld [vmem:[#allocation5 + $0xe4] ss:$16 sps:$4 sm:$0xff]   ;;  %v1395_v2 = vld [vmem:[#allocation5 + $0xec] ss:$16 sps:$4 sm:$0xff]   ;;  %s284_s27 = scalar_lea.vmem [#allocation10], %s1155_s23 }
  0x65   : > { %1634 = vsyncadd (%p1940_p2), [#allocation9], 4294963200  ;;  %550 = vmatprep.mubr.bf16.mxu0 %v1663_v0  ;;  %603 = vmatprep.mubr.bf16.mxu1 %v1663_v0  ;;  %v1397_v3 = vld [vmem:[#allocation5 + $0xe0] ss:$16 sps:$4 sm:$0xff]   ;;  %v1398_v4 = vld [vmem:[#allocation5 + $0xe8] ss:$16 sps:$4 sm:$0xff]  }
  0x66   : > { %518 = vmatprep.subr.bf16.mxu0 %v1393_v1  ;;  %571 = vmatprep.subr.bf16.mxu1 %v1395_v2  ;;  %v1399_v5 = vld [vmem:[#allocation5 + $0xc4] ss:$16 sps:$4 sm:$0xff]   ;;  %v1401_v6 = vld [vmem:[#allocation5 + $0xcc] ss:$16 sps:$4 sm:$0xff]   ;;  %v1403_v7 = vld [vmem:[#allocation5 + $0xc0] ss:$16 sps:$4 sm:$0xff]  }
  0x67   : > { %519 = vmatpush1.bf16.msra.mxu0 %v1397_v3  ;;  %572 = vmatpush1.bf16.msra.mxu1 %v1398_v4  ;;  %v1404_v8 = vld [vmem:[#allocation5 + $0xc8] ss:$16 sps:$4 sm:$0xff]   ;;  %v1405_v9 = vld [vmem:[#allocation5 + $0xa4] ss:$16 sps:$4 sm:$0xff]   ;;  %v1407_v10 = vld [vmem:[#allocation5 + $0xac] ss:$16 sps:$4 sm:$0xff]   ;;  %v326_v3 = vlaneseq }
  0x68   : > { %520 = vmatprep.subr.bf16.mxu0 %v1399_v5  ;;  %573 = vmatprep.subr.bf16.mxu1 %v1401_v6  ;;  %v1409_v11 = vld [vmem:[#allocation5 + $0xa0] ss:$16 sps:$4 sm:$0xff]   ;;  %v1410_v12 = vld [vmem:[#allocation5 + $0xa8] ss:$16 sps:$4 sm:$0xff]   ;;  %v1411_v13 = vld [vmem:[#allocation5 + $0x84] ss:$16 sps:$4 sm:$0xff]  }
  0x69   : > { %v1413_v14 = vld [vmem:[#allocation5 + $0x8c] ss:$16 sps:$4 sm:$0xff]   ;;  %v1415_v15 = vld [vmem:[#allocation5 + $0x80] ss:$16 sps:$4 sm:$0xff]   ;;  %v1416_v16 = vld [vmem:[#allocation5 + $0x88] ss:$16 sps:$4 sm:$0xff]  }
  0x6a   : > { %v1417_v17 = vld [vmem:[#allocation5 + $0x64] ss:$16 sps:$4 sm:$0xff]   ;;  %v1419_v18 = vld [vmem:[#allocation5 + $0x6c] ss:$16 sps:$4 sm:$0xff]   ;;  %v1421_v19 = vld [vmem:[#allocation5 + $0x60] ss:$16 sps:$4 sm:$0xff]  }
  0x6b   : > { %521 = vmatpush1.bf16.msra.mxu0 %v1403_v7  ;;  %574 = vmatpush1.bf16.msra.mxu1 %v1404_v8  ;;  %v1422_v20 = vld [vmem:[#allocation5 + $0x68] ss:$16 sps:$4 sm:$0xff]   ;;  %v1423_v21 = vld [vmem:[#allocation5 + $0x44] ss:$16 sps:$4 sm:$0xff]   ;;  %v1425_v22 = vld [vmem:[#allocation5 + $0x4c] ss:$16 sps:$4 sm:$0xff]  }
  0x6c   : > { %522 = vmatprep.subr.bf16.mxu0 %v1405_v9  ;;  %575 = vmatprep.subr.bf16.mxu1 %v1407_v10  ;;  %v1427_v23 = vld [vmem:[#allocation5 + $0x40] ss:$16 sps:$4 sm:$0xff]   ;;  %v1428_v24 = vld [vmem:[#allocation5 + $0x48] ss:$16 sps:$4 sm:$0xff]   ;;  %v1429_v25 = vld [vmem:[#allocation5 + $0x24] ss:$16 sps:$4 sm:$0xff]  }
  0x6d   : > { %v1431_v26 = vld [vmem:[#allocation5 + $0x2c] ss:$16 sps:$4 sm:$0xff]   ;;  %v1433_v27 = vld [vmem:[#allocation5 + $0x20] ss:$16 sps:$4 sm:$0xff]   ;;  %v1434_v28 = vld [vmem:[#allocation5 + $0x28] ss:$16 sps:$4 sm:$0xff]  }
  0x6e   : > { %v1435_v29 = vld [vmem:[#allocation5 + $0x4] ss:$16 sps:$4 sm:$0xff]   ;;  %v1437_v30 = vld [vmem:[#allocation5 + $0xc] ss:$16 sps:$4 sm:$0xff]   ;;  %v1439_v31 = vld [vmem:[#allocation5] ss:$16 sps:$4 sm:$0xff]  }
  0x6f   : > { %523 = vmatpush1.bf16.msra.mxu0 %v1409_v11  ;;  %576 = vmatpush1.bf16.msra.mxu1 %v1410_v12  ;;  %v1440_v32 = vld [vmem:[#allocation5 + $0x8] ss:$16 sps:$4 sm:$0xff]   ;;  %v1443_v33 = vld [vmem:[#allocation8 + $0x78] sm:$0xff]   ;;  %v1451_v43 = vld [vmem:[#allocation8 + $0x68] sm:$0xff]   ;;  %v327_v4 = vshrl.u32 %v326_v3, 7  ;;  %s1043_s15 = sshll.u32 %s284_s27, 4  ;;  %s1869_s15 = int_to_ptr.vmem [resolvable:$true] %s1043_s15 }
  0x70   : > { %524 = vmatprep.subr.bf16.mxu0 %v1411_v13  ;;  %577 = vmatprep.subr.bf16.mxu1 %v1413_v14  ;;  %v1444_v34 = vld [vmem:[#allocation8 + $0xf8] sm:$0xff]   ;;  %v1447_v38 = vld [vmem:[#allocation8 + $0x70] sm:$0xff]   ;;  %v1452_v44 = vld [vmem:[#allocation8 + $0xe8] sm:$0xff]   ;;  %s1241_s17 = sshll.u32 %s1718_s22, 8  ;;  %s1030_s11 = scalar_lea.sflag [#allocation4], %s1837_s12 }
  0x71   : > { %v1441_v35 = vld [vmem:[%s1843_s28] sm:$0xff]   ;;  %v1442_v42 = vld [vmem:[%s1843_s28 + $0x8] sm:$0xff]   ;;  %v332_v5 = vsub.s32 1, %v327_v4  ;;  %v340_v6 = vsub.s32 3, %v327_v4  ;;  %v328_v7 = vsub.s32 0, %v327_v4  ;;  %v336_v8 = vsub.s32 2, %v327_v4  ;;  %s1874_s14 = scalar_lea.hbm %s1921_s5, %s1241_s17 }
  0x72   : > { %v1445_v36 = vld [vmem:[#allocation8 + $0x38] sm:$0xff]   ;;  %v1448_v39 = vld [vmem:[#allocation8 + $0xf0] sm:$0xff]   ;;  %v1453_v45 = vld [vmem:[#allocation8 + $0x28] sm:$0xff]   ;;  %s1581_s16 = scalar_lea.vmem %s1869_s15, 256  ;;  %p1941_p6 = scmp.ne.s32.totalorder %s1932_s29, 0 }
  0x73   : > { %525 = vmatpush1.bf16.msra.mxu0 %v1415_v15  ;;  %578 = vmatpush1.bf16.msra.mxu1 %v1416_v16  ;;  %v1446_v37 = vld [vmem:[#allocation8 + $0xb8] sm:$0xff]   ;;  %v1449_v40 = vld [vmem:[#allocation8 + $0x30] sm:$0xff]   ;;  %v1454_v46 = vld [vmem:[#allocation8 + $0xa8] sm:$0xff]   ;;  %p1582_p4 = scmp.ne.s32.totalorder %s1869_s15, %s1581_s16  ;;  %s1664_s22 = smov [#allocation10]  }
  0x74   : > { %526 = vmatprep.subr.bf16.mxu0 %v1417_v17  ;;  %579 = vmatprep.subr.bf16.mxu1 %v1419_v18  ;;  %v1450_v41 = vld [vmem:[#allocation8 + $0xb0] sm:$0xff]   ;;  %v1455_v47 = vld [vmem:[#allocation8 + $0x60] sm:$0xff]   ;;  %v1459_v51 = vld [vmem:[#allocation8 + $0x58] sm:$0xff]   ;;  %s1585_s9 = sshll.u32 %s1664_s22, 4  ;;  %s1586_s9 = int_to_ptr.vmem [resolvable:$false] %s1585_s9 }
  0x75   : > { %v1456_v48 = vld [vmem:[#allocation8 + $0xe0] sm:$0xff]   ;;  %v1460_v52 = vld [vmem:[#allocation8 + $0xd8] sm:$0xff]   ;;  %v1463_v55 = vld [vmem:[#allocation8 + $0x50] sm:$0xff]   ;;  %p1583_p11 = pnand %p1582_p4, %p1941_p6  ;;  %s1587_s7 = scalar_lea.vmem %s1586_s9, 512 }
  0x76   : > { %v1457_v49 = vld [vmem:[#allocation8 + $0x20] sm:$0xff]   ;;  %v1461_v53 = vld [vmem:[#allocation8 + $0x18] sm:$0xff]   ;;  %v1464_v56 = vld [vmem:[#allocation8 + $0xd0] sm:$0xff]   ;;  %p1588_p3 = scmp.lt.s32.totalorder %s1869_s15, %s1586_s9  ;;  %p1589_p0 = scmp.lt.s32.totalorder %s1587_s7, %s1581_s16 }
  0x77   : > { %527 = vmatpush1.bf16.msra.mxu0 %v1421_v19  ;;  %580 = vmatpush1.bf16.msra.mxu1 %v1422_v20  ;;  %v1458_v50 = vld [vmem:[#allocation8 + $0xa0] sm:$0xff]   ;;  %v1462_v54 = vld [vmem:[#allocation8 + $0x98] sm:$0xff]   ;;  %v1465_v57 = vld [vmem:[#allocation8 + $0x10] sm:$0xff]   ;;  %p1584_p13 = pneg %p1583_p11 }
  0x78   : > { %528 = vmatprep.subr.bf16.mxu0 %v1423_v21  ;;  %581 = vmatprep.subr.bf16.mxu1 %v1425_v22  ;;  %v1466_v58 = vld [vmem:[#allocation8 + $0x90] sm:$0xff]   ;;  %v1467_v59 = vld [vmem:[#allocation8 + $0x48] sm:$0xff]   ;;  %v1471_v63 = vld [vmem:[#allocation8 + $0x40] sm:$0xff]   ;;  %p1590_p7 = por %p1589_p0, %p1588_p3 }
  0x79   : > { %v1468_v60 = vld [vmem:[#allocation8 + $0xc8] sm:$0xff]   ;;  %v1473_v1 = vld [vmem:[#allocation8] sm:$0xff]   ;;  %v324_v9 = vld [vmem:[#allocation7] sm:$0xf] }
  0x7a   : > { %v1469_v61 = vld [vmem:[#allocation8 + $0x8] sm:$0xff]   ;;  %v1474_v2 = vld [vmem:[#allocation8 + $0x80] sm:$0xff]   ;;  %v333_v12 = vrot.slane %v324_v9, %v332_v5  ;;  %v341_v13 = vrot.slane %v324_v9, %v340_v6  ;;  %v329_v14 = vrot.slane %v324_v9, %v328_v7  ;;  %v337_v15 = vrot.slane %v324_v9, %v336_v8  ;;  %p1591_p9 = pnand %p1590_p7, %p1584_p13 }
  0x7b   : > { %529 = vmatpush1.bf16.msra.mxu0 %v1427_v23  ;;  %582 = vmatpush1.bf16.msra.mxu1 %v1428_v24  ;;  %v1470_v62 = vld [vmem:[#allocation8 + $0x88] sm:$0xff]  }
  0x7c   : > { %530 = vmatprep.subr.bf16.mxu0 %v1429_v25  ;;  %583 = vmatprep.subr.bf16.mxu1 %v1431_v26 }
  0x7f   : > { %531 = vmatpush1.bf16.msra.mxu0 %v1433_v27  ;;  %584 = vmatpush1.bf16.msra.mxu1 %v1434_v28 }
  0x80   : > { %532 = vmatprep.subr.bf16.mxu0 %v1435_v29  ;;  %585 = vmatprep.subr.bf16.mxu1 %v1437_v30 }
  0x83   : > { %533 = vmatpush1.bf16.msra.mxu0 %v1439_v31  ;;  %586 = vmatpush1.bf16.msra.mxu1 %v1440_v32 }
  0x84   : > { %1253 = vmatprep.subr.bf16.mxu0 %v1443_v33  ;;  %1281 = vmatprep.subr.bf16.mxu1 %v1444_v34 }
  0x86   : > { %551 = vmatmul.mubr.bf16.vlgmr.msra.gmra.mxu0 %v1441_v35  ;;  %604 = vmatmul.mubr.bf16.vlgmr.msra.gmra.mxu1 %v1441_v35 }
  0x87   : > { %560 = vmatprep.mubr.bf16.mxu0 %v1663_v0  ;;  %613 = vmatprep.mubr.bf16.mxu1 %v1663_v0  ;;  %v1472_v0 = vld [vmem:[#allocation8 + $0xc0] sm:$0xff]  }
  0x88   : > { %1254 = vmatpush3.bf16.msra.mxu0 %v1445_v36  ;;  %1282 = vmatpush3.bf16.msra.mxu1 %v1446_v37 }
  0x89   : > { %1255 = vmatprep.subr.bf16.mxu0 %v1447_v38  ;;  %1283 = vmatprep.subr.bf16.mxu1 %v1448_v39 }
  0x8c   : > { %1256 = vmatpush3.bf16.msra.mxu0 %v1449_v40  ;;  %1284 = vmatpush3.bf16.msra.mxu1 %v1450_v41 }
  0x8d   : > { %1257 = vmatprep.subr.bf16.mxu0 %v1451_v43  ;;  %1285 = vmatprep.subr.bf16.mxu1 %v1452_v44 }
  0x8e   : > { %561 = vmatmul.mubr.bf16.gmra.mxu0 %v1442_v42  ;;  %614 = vmatmul.mubr.bf16.gmra.mxu1 %v1442_v42 }
  0x90   : > { %1258 = vmatpush3.bf16.msra.mxu0 %v1453_v45  ;;  %1286 = vmatpush3.bf16.msra.mxu1 %v1454_v46 }
  0x91   : > { %1259 = vmatprep.subr.bf16.mxu0 %v1455_v47  ;;  %1287 = vmatprep.subr.bf16.mxu1 %v1456_v48 }
  0x94   : > { %1260 = vmatpush3.bf16.msra.mxu0 %v1457_v49  ;;  %1288 = vmatpush3.bf16.msra.mxu1 %v1458_v50 }
  0x95   : > { %1261 = vmatprep.subr.bf16.mxu0 %v1459_v51  ;;  %1289 = vmatprep.subr.bf16.mxu1 %v1460_v52 }
  0x98   : > { %1262 = vmatpush3.bf16.msra.mxu0 %v1461_v53  ;;  %1290 = vmatpush3.bf16.msra.mxu1 %v1462_v54 }
  0x99   : > { %1263 = vmatprep.subr.bf16.mxu0 %v1463_v55  ;;  %1291 = vmatprep.subr.bf16.mxu1 %v1464_v56 }
  0x9c   : > { %1264 = vmatpush3.bf16.msra.mxu0 %v1465_v57  ;;  %1292 = vmatpush3.bf16.msra.mxu1 %v1466_v58 }
  0x9d   : > { %1265 = vmatprep.subr.bf16.mxu0 %v1467_v59  ;;  %1293 = vmatprep.subr.bf16.mxu1 %v1468_v60 }
  0xa0   : > { %1266 = vmatpush3.bf16.msra.mxu0 %v1469_v61  ;;  %1294 = vmatpush3.bf16.msra.mxu1 %v1470_v62 }
  0xa1   : > { %1267 = vmatprep.subr.bf16.mxu0 %v1471_v63  ;;  %1295 = vmatprep.subr.bf16.mxu1 %v1472_v0 }
  0xa4   : > { %1268 = vmatpush3.bf16.msra.mxu0 %v1473_v1  ;;  %1296 = vmatpush3.bf16.msra.mxu1 %v1474_v2 }
 0x146   : > { %v552_v10 = vpop.f32.mrf.mxu0  ;;  %v605_v11 = vpop.f32.mrf.mxu1 }
 0x147   : > { %v553_v24 = vadd.f32 %v552_v10, %v329_v14  ;;  %v606_v25 = vadd.f32 %v605_v11, %v337_v15  ;;  %v1194_v11 = vld [vmem:[%s1920_s4] ss:$0 sm:$0xff] }
 0x148   : > { %v554_v16 = vpop.f32.mrf.mxu0  ;;  %v607_v17 = vpop.f32.mrf.mxu1 }
 0x149   : > { %v555_v20 = vadd.f32 %v554_v16, %v333_v12  ;;  %v608_v21 = vadd.f32 %v607_v17, %v341_v13  ;;  %v624_v38 = vmax.f32 %v553_v24, 0.0  ;;  %v626_v39 = vmax.f32 %v606_v25, 0.0 }
 0x14a   : > { %v556_v18 = vpop.f32.mrf.mxu0  ;;  %v609_v19 = vpop.f32.mrf.mxu1 }
 0x14b   : > { %v557_v22 = vadd.f32 %v556_v18, %v329_v14  ;;  %v610_v23 = vadd.f32 %v609_v19, %v337_v15  ;;  %v625_v34 = vmax.f32 %v555_v20, 0.0  ;;  %v627_v35 = vmax.f32 %v608_v21, 0.0 }
 0x14c   : > { %v558_v26 = vpop.f32.mrf.mxu0  ;;  %v611_v27 = vpop.f32.mrf.mxu1 }
 0x14d   : > { %v559_v28 = vadd.f32 %v558_v26, %v333_v12  ;;  %v612_v29 = vadd.f32 %v611_v27, %v341_v13  ;;  %v628_v30 = vmax.f32 %v557_v22, 0.0  ;;  %v630_v31 = vmax.f32 %v610_v23, 0.0 }
 0x14e   : > { %v562_v32 = vpop.f32.mrf.mxu0  ;;  %v615_v33 = vpop.f32.mrf.mxu1 }
 0x14f   : > { %v629_v36 = vmax.f32 %v559_v28, 0.0  ;;  %v631_v37 = vmax.f32 %v612_v29, 0.0  ;;  %v640_v44 = vpack.c.bf16 %v628_v30, %v624_v38  ;;  %v642_v45 = vpack.c.bf16 %v630_v31, %v626_v39 }
 0x150   : > { %v564_v40 = vpop.f32.mrf.mxu0  ;;  %v617_v41 = vpop.f32.mrf.mxu1  ;;  %v563_v52 = vadd.f32 %v562_v32, %v329_v14  ;;  %v616_v53 = vadd.f32 %v615_v33, %v337_v15 }
 0x151   : > { %v641_v42 = vpack.c.bf16 %v629_v36, %v625_v34  ;;  %v643_v43 = vpack.c.bf16 %v631_v37, %v627_v35  ;;  %v565_v46 = vadd.f32 %v564_v40, %v333_v12  ;;  %v618_v49 = vadd.f32 %v617_v41, %v341_v13 }
 0x152   : > { %v566_v47 = vpop.f32.mrf.mxu0  ;;  %v619_v48 = vpop.f32.mrf.mxu1  ;;  %v632_v0 = vmax.f32 %v563_v52, 0.0  ;;  %v634_v1 = vmax.f32 %v616_v53, 0.0 }
 0x153   : > { %v567_v50 = vadd.f32 %v566_v47, %v329_v14  ;;  %v620_v51 = vadd.f32 %v619_v48, %v337_v15  ;;  %943 = vmatprep.mubr.bf16.mxu0 %v641_v42  ;;  %992 = vmatprep.mubr.bf16.mxu1 %v643_v43  ;;  %v633_v60 = vmax.f32 %v565_v46, 0.0  ;;  %v635_v61 = vmax.f32 %v618_v49, 0.0 }
 0x154   : > { %v568_v54 = vpop.f32.mrf.mxu0  ;;  %v621_v55 = vpop.f32.mrf.mxu1  ;;  %944 = vmatmul.mubr.bf16.vlgmr.msra.gmra.mxu0 %v640_v44  ;;  %993 = vmatmul.mubr.bf16.vlgmr.msra.gmra.mxu1 %v642_v45 }
 0x155   : > { %v569_v56 = vadd.f32 %v568_v54, %v333_v12  ;;  %v622_v57 = vadd.f32 %v621_v55, %v341_v13  ;;  %v636_v58 = vmax.f32 %v567_v50, 0.0  ;;  %v638_v59 = vmax.f32 %v620_v51, 0.0 }
 0x157   : > { %v637_v62 = vmax.f32 %v569_v56, 0.0  ;;  %v639_v63 = vmax.f32 %v622_v57, 0.0  ;;  %v644_v4 = vpack.c.bf16 %v636_v58, %v632_v0  ;;  %v646_v5 = vpack.c.bf16 %v638_v59, %v634_v1 }
 0x159   : > { %v645_v2 = vpack.c.bf16 %v637_v62, %v633_v60  ;;  %v647_v3 = vpack.c.bf16 %v639_v63, %v635_v61 }
 0x15b   : > { %951 = vmatprep.mubr.bf16.mxu0 %v645_v2  ;;  %1000 = vmatprep.mubr.bf16.mxu1 %v647_v3 }
 0x15c   : > { %952 = vmatmul.mubr.bf16.gmra.mxu0 %v644_v4  ;;  %1001 = vmatmul.mubr.bf16.gmra.mxu1 %v646_v5 }
 0x214   : > { %v1269_v6 = vpop.f32.mrf.mxu0  ;;  %v1297_v7 = vpop.f32.mrf.mxu1 }
 0x216   : > { %v1270_v8 = vpop.f32.mrf.mxu0  ;;  %v1298_v9 = vpop.f32.mrf.mxu1 }
 0x217   : > { %v1271_v10 = vadd.f32 %v1270_v8, %v1269_v6  ;;  %v1299_v20 = vadd.f32 %v1298_v9, %v1297_v7 }
 0x218   : > { %v1272_v12 = vpop.f32.mrf.mxu0  ;;  %v1300_v13 = vpop.f32.mrf.mxu1 }
 0x219   : > { %v946_v16 = vadd.f32 %v1271_v10, %v1194_v11 }
 0x21a   : > { %v1273_v14 = vpop.f32.mrf.mxu0  ;;  %v1301_v15 = vpop.f32.mrf.mxu1 }
 0x21b   : > { %v1274_v17 = vadd.f32 %v1273_v14, %v1272_v12  ;;  %v1302_v22 = vadd.f32 %v1301_v15, %v1300_v13  ;;  %v995_v25 = vadd.f32 %v1299_v20, %v946_v16 }
 0x21c   : > { %v1275_v18 = vpop.f32.mrf.mxu0  ;;  %v1303_v19 = vpop.f32.mrf.mxu1 }
 0x21d   : > { %v949_v21 = vadd.f32 %v1274_v17, %v1194_v11 }
 0x21e   : > { %v1276_v23 = vpop.f32.mrf.mxu0  ;;  %v1304_v24 = vpop.f32.mrf.mxu1 }
 0x21f   : > { %v998_v26 = vadd.f32 %v1302_v22, %v949_v21  ;;  %v1277_v27 = vadd.f32 %v1276_v23, %v1275_v18  ;;  %v1305_v35 = vadd.f32 %v1304_v24, %v1303_v19 }
 0x220   : > { %v1278_v28 = vpop.f32.mrf.mxu0  ;;  %v1306_v29 = vpop.f32.mrf.mxu1 }
 0x221   : > { %v1245_v30 = vpack.c.bf16 %v998_v26, %v995_v25  ;;  %v954_v33 = vadd.f32 %v1277_v27, %v1194_v11 }
 0x222   : > { %v1279_v31 = vpop.f32.mrf.mxu0  ;;  %v1307_v32 = vpop.f32.mrf.mxu1 }
 0x223   : > { %1246 = vst [vmem:[%s284_s27] sm:$0xff] %v1245_v30   ;;  %v1280_v34 = vadd.f32 %v1279_v31, %v1278_v28  ;;  %v1308_v37 = vadd.f32 %v1307_v32, %v1306_v29  ;;  %v1003_v38 = vadd.f32 %v1305_v35, %v954_v33 }
 0x225   : > { %v957_v36 = vadd.f32 %v1280_v34, %v1194_v11 }
 0x227   : > { %v1006_v39 = vadd.f32 %v1308_v37, %v957_v36 }
 0x229   : > { %v1250_v40 = vpack.c.bf16 %v1006_v39, %v1003_v38 }
 0x22b   : > { %1252 = vst [vmem:[%s284_s27 + $0x8] sm:$0xff] %v1250_v40  }
 0x22c   : > { %1594 = shalt.err (!%p1591_p9)
}
 0x22d   : > { %s1595_s23 = scalar_lea.hbm %s1874_s14, 256  ;;  %s1599_s24 = scalar_lea.hbm %s1921_s5, 1024 }
 0x22e   : > { %p1596_p1 = scmp.ne.s32.totalorder %s1874_s14, %s1595_s23  ;;  %p1600_p10 = scmp.lt.s32.totalorder %s1874_s14, %s1921_s5 }
 0x22f   : > { %p1601_p12 = scmp.lt.s32.totalorder %s1599_s24, %s1595_s23 }
 0x230   : > { %p1597_p8 = pnand %p1596_p1, %p1941_p6 }
 0x231   : > { %p1602_p2 = por %p1601_p12, %p1600_p10 }
 0x232   : > { %p1598_p5 = pneg %p1597_p8 }
 0x234   : > { %p1603_p4 = pnand %p1602_p2, %p1598_p5 }
 0x236   : > { %1606 = shalt.err (!%p1603_p4)
}
 0x237   : > { %s1665_s17 = smov 64   ;;  %s1666_s30 = smov 4  }
 0x238   : > { %1323 = dma.vmem_to_hbm [thread:$0]  (%p1941_p6), %s1869_s15, 256, %s1874_s14, %s1030_s11, %s1665_s17, %s1665_s17, %s1666_s30  }
 0x239 PF: > { %p1350_p11 = scmp.ge.s32.totalorder %s1653_s21, 2  ;;  %s1058_s13 = sand.u32 1, %s1641_s18  }
 0x23a   : > { %p1942_p13 = scmp.ne.s32.totalorder %s1928_s25, 0  ;;  %s1059_s16 = scalar_lea.sflag [#allocation4], %s1058_s13 }
 0x23c   : > { %p1340_p3 = pnand %p1350_p11, %p1942_p13 }
 0x23e   : > { %p1341_p0 = pneg %p1340_p3 }
 0x240   : > { %1636 = dma.done.wait (%p1341_p0), %s1059_s16, 256  }
 0x241   : > { %1638 = vsyncadd (%p1341_p0), %s1059_s16, 4294967040  ;;  %p20_p7 = scmp.ge.s32.totalorder %s1779_s6, 6   ;;  %s1943_s18 = smov %s1645_s19 }
 0x242   : > { %s1944_s19 = smov %s1649_s20  ;;  %s1945_s20 = smov %s1789_s10 }
 0x243   : > { %s1946_s21 = smov %s1779_s6  ;;  %22 = sbr.rel (!%p20_p7) target bundleno = 7 (0x7), region = 97 }
 0x248   :  { %1064 = vsyncpa [#allocation3], 1 }
 0x249   :  { %1066 = vsyncpa [#allocation3 + $0x1], 1 }
 0x24a   :  { %1067 = vsyncpa [#allocation6], 1 }
 0x24b   :  { %1068 = vsyncpa [#allocation9], 1 }
 0x24c   :  { %1069 = vsyncpa [#allocation4], 1 }
 0x24d   :  { %1071 = vsyncpa [#allocation4 + $0x1], 1 }

</bundles_post_ra>
